<compile_context>
chip_gen: v5e
topology: v5e:2x2
jax: 0.10.0
libtpu: 0.0.40
codegen_flags: <defaults>
</compile_context>

<pallas_src>
import functools
import math

import jax
import jax.numpy as jnp
from jax import lax
from jax.experimental import pallas as pl
from jax.experimental.pallas import tpu as pltpu


def _round_up(x, m):
    return ((x + m - 1) // m) * m


def _mlp_kernel(x_ref, w1_ref, b1_ref, w2_ref, b2_ref, o_ref, *, approx_gelu):
    # x_ref: (TM, Dp)  w1_ref: (Dp, Hp)  b1_ref: (1, Hp)  w2_ref: (Hp, Dp)  b2_ref: (1, Dp)
    # Cast to the MXU operand dtype inside the kernel (no extra HBM pass).
    x = x_ref[...].astype(w1_ref.dtype)
    prec = lax.Precision.HIGHEST if w1_ref.dtype == jnp.float32 else None

    # fc1 on the MXU, f32 accumulation, bias add in f32.
    h = jnp.dot(x, w1_ref[...], preferred_element_type=jnp.float32,
                precision=prec) + b1_ref[...]

    if approx_gelu:
        h = jax.nn.gelu(h, approximate=True)  # tanh form -> EUP slot
    else:
        # Exact GELU (erf form) to match torch.nn.GELU() default.
        h = 0.5 * h * (1.0 + lax.erf(h * (1.0 / math.sqrt(2.0))))

    # dropout1: identity (eval mode).

    # fc2 on the MXU.
    y = jnp.dot(h.astype(w2_ref.dtype), w2_ref[...],
                preferred_element_type=jnp.float32, precision=prec) + b2_ref[...]
    o_ref[...] = y.astype(o_ref.dtype)


def _pack_blockdiag(w, pack):
    """(din, dout) -> block-diagonal (pack*din, pack*dout)."""
    din, dout = w.shape
    eye = jnp.eye(pack, dtype=w.dtype)
    return jnp.einsum("pq,io->piqo", eye, w).reshape(pack * din, pack * dout)


def choose_pack(D):
    """How many logical rows to fold into one 128-lane row."""
    if D < 128 and 128 % D == 0:
        return 128 // D
    return 1


def pack_jian_params(w1, b1, w2, b2, *, pack, param_dtype=None):
    """One-time (parameter-init) packing. Weights are (in, out): y = x @ W + b.

    `param_dtype=jnp.bfloat16` narrows the MXU operands (f32 accumulation and
    f32 bias/GELU math are preserved inside the kernel).
    """
    if param_dtype is not None:
        w1, b1, w2, b2 = (t.astype(param_dtype) for t in (w1, b1, w2, b2))
    if pack > 1:
        w1p = _pack_blockdiag(w1, pack)
        w2p = _pack_blockdiag(w2, pack)
        b1p = jnp.tile(b1, pack)
        b2p = jnp.tile(b2, pack)
    else:
        w1p, w2p, b1p, b2p = w1, w2, b1, b2
    # Biases kept f32: bias add + GELU run in f32 regardless of MXU dtype.
    b1p = b1p.reshape(1, -1).astype(jnp.float32)
    b2p = b2p.reshape(1, -1).astype(jnp.float32)
    return w1p, b1p, w2p, b2p


def jian_block(x, w1p, b1p, w2p, b2p, *, pack, tile_m=2048, approx_gelu=False):
    """x: [B, S, D].  Packed params from `pack_jian_params` (hoisted, one-time).

    Output dtype == x dtype (pass bf16 in for an end-to-end bf16 stream).
    """
    B, S, D = x.shape
    Dp = D * pack
    Hp = w1p.shape[1]
    assert w1p.shape[0] == Dp and w2p.shape == (Hp, Dp)
    M = B * S

    # ---- lane packing: fold `pack` rows into one 128-lane row ---------------
    x2 = x.reshape(M, D)
    M_pad = _round_up(M, pack)
    if M_pad != M:                      # <= pack-1 rows; keeps lane-dense layout
        x2 = jnp.pad(x2, ((0, M_pad - M), (0, 0)))
    Mp = M_pad // pack
    x2 = x2.reshape(Mp, Dp)             # row-major fold: free, no data movement

    # ---- row tiling ----------------------------------------------------------
    sub = 16 if x2.dtype == jnp.bfloat16 else 8   # dtype-dependent sublane multiple
    tile_m = max(sub, _round_up(tile_m, sub))
    if Mp <= sub:
        tile_m_eff = Mp                               # single block == full dim
    elif Mp <= 2 * tile_m:
        tile_m_eff = _round_up(pl.cdiv(Mp, 2), sub)   # 2 blocks (v7x megacore)
    else:
        ntiles = pl.cdiv(Mp, tile_m)
        if ntiles % 2:
            ntiles += 1                               # even grid for v7x's 2 TCs
        tile_m_eff = _round_up(pl.cdiv(Mp, ntiles), sub)

    grid = (pl.cdiv(Mp, tile_m_eff),)   # ragged last block handled by Pallas

    H = Hp // pack
    cost = pl.CostEstimate(
        flops=4 * M * D * H,
        transcendentals=M * H,
        bytes_accessed=int(
            x2.size * x2.dtype.itemsize                       # activation stream in
            + Mp * Dp * jnp.dtype(x.dtype).itemsize           # activation stream out
            + w1p.size * w1p.dtype.itemsize
            + w2p.size * w2p.dtype.itemsize
            + (b1p.size + b2p.size) * 4
        ),
    )

    out = pl.pallas_call(
        functools.partial(_mlp_kernel, approx_gelu=approx_gelu),
        out_shape=jax.ShapeDtypeStruct((Mp, Dp), x.dtype),
        grid_spec=pltpu.PrefetchScalarGridSpec(
            num_scalar_prefetch=0,
            grid=grid,
            in_specs=[
                pl.BlockSpec((tile_m_eff, Dp), lambda i: (i, 0)),   # streamed x
                pl.BlockSpec((Dp, Hp), lambda i: (0, 0)),           # resident weights
                pl.BlockSpec((1, Hp), lambda i: (0, 0)),
                pl.BlockSpec((Hp, Dp), lambda i: (0, 0)),
                pl.BlockSpec((1, Dp), lambda i: (0, 0)),
            ],
            out_specs=pl.BlockSpec((tile_m_eff, Dp), lambda i: (i, 0)),
        ),
        compiler_params=pltpu.CompilerParams(
            dimension_semantics=("parallel",),
            vmem_limit_bytes=32 * 1024 * 1024,
        ),
        cost_estimate=cost,
    )(x2, w1p, b1p, w2p, b2p)

    y = out.reshape(M_pad, D)
    if M_pad != M:
        y = y[:M]                      # drop the <= pack-1 padded rows
    return y.reshape(B, S, D)


def _reference(x, w1, b1, w2, b2):
    h = x @ w1 + b1
    h = 0.5 * h * (1.0 + lax.erf(h / jnp.sqrt(2.0)))
    return h @ w2 + b2


if __name__ == "__main__":
    # Small shapes consistent with the module: input_dim=32, mlp_dim=64.
    B, S, D, H = 2, 16, 32, 64
    key = jax.random.PRNGKey(0)
    kx, kw1, kb1, kw2, kb2 = jax.random.split(key, 5)

    x = jax.random.normal(kx, (B, S, D), dtype=jnp.float32)
    # Deterministic Linear-like init; weights stored as (in, out) so y = x @ W + b.
    w1 = jax.random.uniform(kw1, (D, H), minval=-1.0, maxval=1.0) / jnp.sqrt(D)
    b1 = jax.random.uniform(kb1, (H,), minval=-1.0, maxval=1.0) / jnp.sqrt(D)
    w2 = jax.random.uniform(kw2, (H, D), minval=-1.0, maxval=1.0) / jnp.sqrt(H)
    b2 = jax.random.uniform(kb2, (D,), minval=-1.0, maxval=1.0) / jnp.sqrt(H)

    y_ref = _reference(x, w1, b1, w2, b2)
    pack = choose_pack(D)

    # ---- full-precision (f32) path: true f32 MXU, tight tolerance -----------
    params_f32 = pack_jian_params(w1, b1, w2, b2, pack=pack)
    y = jax.block_until_ready(jian_block(x, *params_f32, pack=pack))
    assert y.shape == x.shape and y.dtype == x.dtype
    assert jnp.allclose(y, y_ref, atol=1e-5, rtol=1e-5), "f32 mismatch vs reference"

    # ---- bf16 end-to-end path: bf16 stream in/out, bf16 MXU, f32 accum ------
    params_bf16 = pack_jian_params(w1, b1, w2, b2, pack=pack,
                                   param_dtype=jnp.bfloat16)
    y_bf16 = jax.block_until_ready(
        jian_block(x.astype(jnp.bfloat16), *params_bf16, pack=pack))
    assert y_bf16.dtype == jnp.bfloat16
    assert jnp.allclose(y_bf16.astype(jnp.float32), y_ref, atol=5e-2, rtol=5e-2), \
        "bf16 mismatch vs reference"

    print("KERNEL_OK")
</pallas_src>

<mosaic_0001>
module attributes {stable_mosaic.version = 11 : i64} {
  func.func @_mlp_kernel(%arg0: i32, %arg1: memref<8x128xf32, #tpu.memory_space<vmem>>, %arg2: memref<128x256xf32, #tpu.memory_space<vmem>>, %arg3: memref<1x256xf32, #tpu.memory_space<vmem>>, %arg4: memref<256x128xf32, #tpu.memory_space<vmem>>, %arg5: memref<1x128xf32, #tpu.memory_space<vmem>>, %arg6: memref<8x128xf32, #tpu.memory_space<vmem>>) attributes {dimension_semantics = [#tpu.dimension_semantics<parallel>], iteration_bounds = array<i64: 1>, scalar_prefetch = 0 : i64, scratch_operands = 0 : i64, tpu.core_type = #tpu.core_type<tc>, window_params = [{transform_indices = @transform_0, window_bounds = array<i64: 8, 128>}, {pipeline_mode = #tpu.pipeline_mode<synchronous>, transform_indices = @transform_1, window_bounds = array<i64: 128, 256>}, {pipeline_mode = #tpu.pipeline_mode<synchronous>, transform_indices = @transform_2, window_bounds = array<i64: 1, 256>}, {pipeline_mode = #tpu.pipeline_mode<synchronous>, transform_indices = @transform_3, window_bounds = array<i64: 256, 128>}, {pipeline_mode = #tpu.pipeline_mode<synchronous>, transform_indices = @transform_4, window_bounds = array<i64: 1, 128>}, {transform_indices = @transform_5, window_bounds = array<i64: 8, 128>}]} {
    %c0 = arith.constant 0 : index
    %c0_0 = arith.constant 0 : index
    %0 = vector.load %arg1[%c0, %c0_0] : memref<8x128xf32, #tpu.memory_space<vmem>>, vector<8x128xf32>
    %c0_1 = arith.constant 0 : index
    %c0_2 = arith.constant 0 : index
    %1 = vector.load %arg2[%c0_1, %c0_2] : memref<128x256xf32, #tpu.memory_space<vmem>>, vector<128x256xf32>
    %cst = arith.constant dense<0.000000e+00> : vector<8x256xf32>
    %2 = tpu.matmul %0, %1, %cst {dimension_numbers = #tpu.dot_dimension_numbers<[1], [0], [0], [1], [0, 0, 1, 1], [], []>, precision = #tpu.contract_precision<fp32>} : vector<8x128xf32>, vector<128x256xf32>, vector<8x256xf32> -> vector<8x256xf32>
    %c0_3 = arith.constant 0 : index
    %c0_4 = arith.constant 0 : index
    %3 = vector.load %arg3[%c0_3, %c0_4] : memref<1x256xf32, #tpu.memory_space<vmem>>, vector<1x256xf32>
    %4 = vector.broadcast %3 : vector<1x256xf32> to vector<8x256xf32>
    %5 = arith.addf %2, %4 : vector<8x256xf32>
    %cst_5 = arith.constant 5.000000e-01 : f32
    %6 = vector.broadcast %cst_5 : f32 to vector<8x256xf32>
    %7 = arith.mulf %6, %5 : vector<8x256xf32>
    %cst_6 = arith.constant 0.707106769 : f32
    %8 = vector.broadcast %cst_6 : f32 to vector<8x256xf32>
    %9 = arith.mulf %5, %8 : vector<8x256xf32>
    %10 = math.erf %9 : vector<8x256xf32>
    %cst_7 = arith.constant 1.000000e+00 : f32
    %11 = vector.broadcast %cst_7 : f32 to vector<8x256xf32>
    %12 = arith.addf %11, %10 : vector<8x256xf32>
    %13 = arith.mulf %7, %12 : vector<8x256xf32>
    %c0_8 = arith.constant 0 : index
    %c0_9 = arith.constant 0 : index
    %14 = vector.load %arg4[%c0_8, %c0_9] : memref<256x128xf32, #tpu.memory_space<vmem>>, vector<256x128xf32>
    %cst_10 = arith.constant dense<0.000000e+00> : vector<8x128xf32>
    %15 = tpu.matmul %13, %14, %cst_10 {dimension_numbers = #tpu.dot_dimension_numbers<[1], [0], [0], [1], [0, 0, 1, 1], [], []>, precision = #tpu.contract_precision<fp32>} : vector<8x256xf32>, vector<256x128xf32>, vector<8x128xf32> -> vector<8x128xf32>
    %c0_11 = arith.constant 0 : index
    %c0_12 = arith.constant 0 : index
    %16 = vector.load %arg5[%c0_11, %c0_12] : memref<1x128xf32, #tpu.memory_space<vmem>>, vector<1x128xf32>
    %17 = vector.broadcast %16 : vector<1x128xf32> to vector<8x128xf32>
    %18 = arith.addf %15, %17 : vector<8x128xf32>
    %c0_13 = arith.constant 0 : index
    %c0_14 = arith.constant 0 : index
    %19 = vector.load %arg6[%c0_13, %c0_14] : memref<8x128xf32, #tpu.memory_space<vmem>>, vector<8x128xf32>
    tpu.vector_store %arg6[%c0_13, %c0_14], %18 {strides = array<i32>} : memref<8x128xf32, #tpu.memory_space<vmem>>, vector<8x128xf32>,
    return
  }
  func.func @transform_0(%arg0: i32) -> (i32, i32) {
    %c0_i32 = arith.constant 0 : i32
    %c0_i32_0 = arith.constant 0 : i32
    return %arg0, %c0_i32 : i32, i32
  }
  func.func @transform_1(%arg0: i32) -> (i32, i32) {
    %c0_i32 = arith.constant 0 : i32
    %c0_i32_0 = arith.constant 0 : i32
    %c0_i32_1 = arith.constant 0 : i32
    return %c0_i32, %c0_i32_0 : i32, i32
  }
  func.func @transform_2(%arg0: i32) -> (i32, i32) {
    %c0_i32 = arith.constant 0 : i32
    %c0_i32_0 = arith.constant 0 : i32
    %c0_i32_1 = arith.constant 0 : i32
    return %c0_i32, %c0_i32_0 : i32, i32
  }
  func.func @transform_3(%arg0: i32) -> (i32, i32) {
    %c0_i32 = arith.constant 0 : i32
    %c0_i32_0 = arith.constant 0 : i32
    %c0_i32_1 = arith.constant 0 : i32
    return %c0_i32, %c0_i32_0 : i32, i32
  }
  func.func @transform_4(%arg0: i32) -> (i32, i32) {
    %c0_i32 = arith.constant 0 : i32
    %c0_i32_0 = arith.constant 0 : i32
    %c0_i32_1 = arith.constant 0 : i32
    return %c0_i32, %c0_i32_0 : i32, i32
  }
  func.func @transform_5(%arg0: i32) -> (i32, i32) {
    %c0_i32 = arith.constant 0 : i32
    %c0_i32_0 = arith.constant 0 : i32
    return %arg0, %c0_i32 : i32, i32
  }
}

</mosaic_0001>

<bundles_post_ra>
// kernel: tpu_custom_call.1
= control target key start
LH: loop header
LB: loop body
LE: loop exit
PB: predicated region body
PF: predicated region fallthrough
CT: control target
= control target key end

     0   :  { %10 = vsyncpa [#allocation3], 0  ;;  %s2853_s0 = inlined_call_operand.hbm [shape: f32[8,128], index: 0, kind: input, shape index: {}]   ;;  %s2854_s1 = inlined_call_operand.hbm [shape: f32[128,256], index: 1, kind: input, shape index: {}]   ;;  %s2855_s2 = inlined_call_operand.hbm [shape: f32[1,256], index: 2, kind: input, shape index: {}]   ;;  %s2856_s3 = inlined_call_operand.hbm [shape: f32[256,128], index: 3, kind: input, shape index: {}]   ;;  %s2857_s4 = inlined_call_operand.vmem [shape: f32[1,128], index: 4, kind: input, shape index: {}]   ;;  %s2858_s5 = inlined_call_operand.hbm [shape: f32[8,128], index: 5, kind: output, shape index: {}]  }
   0x1   :  { %11 = vsyncpa [#allocation6], 0 }
   0x2   :  { %12 = vsyncpa [#allocation9], 0  ;;  %s29_s20 = sshll.u32 %s2854_s1, 4  ;;  %s30_s20 = int_to_ptr.hbm [resolvable:$true] %s29_s20 }
   0x3   :  { %13 = vsyncpa [#allocation4], 0  ;;  %s1771_s21 = smov [#allocation5]   ;;  %s19_s25 = sshll.u32 %s2853_s0, 4  ;;  %s20_s25 = int_to_ptr.hbm [resolvable:$true] %s19_s25 }
   0x4   :  { %s31_s22 = sshll.u32 %s1771_s21, 4  ;;  %s1772_s26 = smov 256   ;;  %s32_s22 = int_to_ptr.vmem [resolvable:$true] %s31_s22 }
   0x5   :  { %s1773_s27 = smov 16   ;;  %s1774_s28 = smov [#allocation2]  }
   0x6   :  { %37 = dma.hbm_to_vmem [thread:$0]  %s30_s20, 4096, %s32_s22, [#allocation6], %s1772_s26, %s1772_s26, %s1773_s27  }
   0x7   :  { %s21_s29 = sshll.u32 %s1774_s28, 4  ;;  %s43_s7 = sshll.u32 %s2855_s2, 4  ;;  %s22_s29 = int_to_ptr.vmem [resolvable:$true] %s21_s29  ;;  %s44_s7 = int_to_ptr.hbm [resolvable:$true] %s43_s7 }
   0x8   :  { %24 = dma.hbm_to_vmem [thread:$0]  %s20_s25, 128, %s22_s29, [#allocation3]  }
   0x9   :  { %s53_s9 = sshll.u32 %s2856_s3, 4  ;;  %s1775_s10 = smov [#allocation7]   ;;  %s54_s9 = int_to_ptr.hbm [resolvable:$true] %s53_s9 }
   0xa   :  { %s45_s11 = sshll.u32 %s1775_s10, 4  ;;  %s1776_s0 = smov [#allocation8]   ;;  %s46_s11 = int_to_ptr.vmem [resolvable:$true] %s45_s11 }
   0xb   :  { %48 = dma.hbm_to_vmem [thread:$0]  %s44_s7, 32, %s46_s11, [#allocation6]  }
   0xc   :  { %s55_s12 = sshll.u32 %s1776_s0, 4  ;;  %s1777_s13 = smov 128   ;;  %s56_s12 = int_to_ptr.vmem [resolvable:$true] %s55_s12 }
   0xd   :  { %s1778_s14 = smov 8  }
   0xe   :  { %61 = dma.hbm_to_vmem [thread:$0]  %s54_s9, 4096, %s56_s12, [#allocation9], %s1777_s13, %s1777_s13, %s1778_s14  }
   0xf   :  { %1763 = dma.done.wait [#allocation3], 128  }
  0x10   :  { %1764 = vsyncadd [#allocation3], 4294967168 }
  0x11   :  { %1765 = dma.done.wait [#allocation6], 4128  }
  0x12   :  { %1766 = vsyncadd [#allocation6], 4294963168 }
  0x13   :  { %1767 = dma.done.wait [#allocation9], 4096  }
  0x14   :  { %1768 = vsyncadd [#allocation9], 4294963200  ;;  %v111_v0 = vld [vmem:[#allocation5 + $0xf0] sm:$0xff]  ;;  %v109_v1 = vld [vmem:[#allocation5 + $0xe0] sm:$0xff]  ;;  %s1615_s18 = sshll.u32 %s2858_s5, 4  ;;  %s1616_s18 = int_to_ptr.hbm [resolvable:$true] %s1615_s18 }
  0x15   :  { %v107_v2 = vld [vmem:[#allocation5 + $0xd0] sm:$0xff]  ;;  %v1822_v3 = vand.u32 4294901760, %v111_v0  ;;  %v1824_v4 = vand.u32 4294901760, %v109_v1  ;;  %v105_v6 = vld [vmem:[#allocation5 + $0xc0] sm:$0xff]  ;;  %v112_v60 = vld [vmem:[#allocation5 + $0xf8] sm:$0xff] }
  0x16   :  { %v1826_v5 = vand.u32 4294901760, %v107_v2  ;;  %v103_v7 = vld [vmem:[#allocation5 + $0xb0] sm:$0xff]  ;;  %v101_v8 = vld [vmem:[#allocation5 + $0xa0] sm:$0xff]  ;;  %v1828_v9 = vand.u32 4294901760, %v105_v6  ;;  %v110_v63 = vld [vmem:[#allocation5 + $0xe8] sm:$0xff] }
  0x17   :  { %v1830_v10 = vand.u32 4294901760, %v103_v7  ;;  %v1832_v11 = vand.u32 4294901760, %v101_v8  ;;  %v99_v12 = vld [vmem:[#allocation5 + $0x90] sm:$0xff]  ;;  %v97_v13 = vld [vmem:[#allocation5 + $0x80] sm:$0xff]  ;;  %v1835_v14 = vsub.f32 %v111_v0, %v1822_v3  ;;  %120 = vmatpush.msra.mxu0 %v1822_v3  ;;  %v1839_v15 = vsub.f32 %v109_v1, %v1824_v4  ;;  %316 = vmatpush.msra.mxu3 %v1822_v3 }
  0x18   :  { %v1843_v16 = vsub.f32 %v107_v2, %v1826_v5  ;;  %v1845_v17 = vand.u32 4294901760, %v99_v12  ;;  %v1848_v18 = vsub.f32 %v105_v6, %v1828_v9  ;;  %v1861_v24 = vand.u32 4294901760, %v97_v13  ;;  %v95_v25 = vld [vmem:[#allocation5 + $0x70] sm:$0xff]  ;;  %v93_v34 = vld [vmem:[#allocation5 + $0x60] sm:$0xff] }
  0x19   :  { %v1851_v19 = vsub.f32 %v103_v7, %v1830_v10  ;;  %v1854_v20 = vsub.f32 %v101_v8, %v1832_v11  ;;  %263 = vmatpush.msra.mxu2 %v1835_v14  ;;  %122 = vmatpush.msra.mxu0 %v1824_v4  ;;  %v2873_v21 = vand.u32 4294901760, %v1835_v14  ;;  %v2872_v22 = vand.u32 4294901760, %v1839_v15  ;;  %v91_v35 = vld [vmem:[#allocation5 + $0x50] sm:$0xff]  ;;  %v89_v40 = vld [vmem:[#allocation5 + $0x40] sm:$0xff] }
  0x1a   :  { %v2871_v23 = vand.u32 4294901760, %v1843_v16  ;;  %318 = vmatpush.msra.mxu3 %v1824_v4  ;;  %v2868_v26 = vand.u32 4294901760, %v1848_v18  ;;  %v1867_v28 = vsub.f32 %v99_v12, %v1845_v17  ;;  %v1882_v33 = vand.u32 4294901760, %v95_v25  ;;  %v87_v48 = vld [vmem:[#allocation5 + $0x30] sm:$0xff]  ;;  %v85_v53 = vld [vmem:[#allocation5 + $0x20] sm:$0xff] }
  0x1b   :  { %v2867_v27 = vand.u32 4294901760, %v1851_v19  ;;  %266 = vmatpush.msra.mxu2 %v1839_v15  ;;  %v163_v29 = vsub.f32 %v1835_v14, %v2873_v21  ;;  %124 = vmatpush.msra.mxu0 %v1826_v5  ;;  %v169_v30 = vsub.f32 %v1839_v15, %v2872_v22  ;;  %v2865_v32 = vand.u32 4294901760, %v1854_v20  ;;  %v83_v59 = vld [vmem:[#allocation5 + $0x10] sm:$0xff]  ;;  %v81_v6 = vld [vmem:[#allocation5] sm:$0xff] }
  0x1c   :  { %v175_v31 = vsub.f32 %v1843_v16, %v2871_v23  ;;  %320 = vmatpush.msra.mxu3 %v1826_v5  ;;  %v181_v38 = vsub.f32 %v1848_v18, %v2868_v26  ;;  %v1890_v39 = vsub.f32 %v97_v13, %v1861_v24  ;;  %v2864_v42 = vand.u32 4294901760, %v1867_v28  ;;  %v108_v13 = vld [vmem:[#allocation5 + $0xd8] sm:$0xff] }
  0x1d   :  { %v164_v36 = vand.u32 4294901760, %v163_v29  ;;  %269 = vmatpush.msra.mxu2 %v1843_v16  ;;  %v170_v37 = vand.u32 4294901760, %v169_v30  ;;  %126 = vmatpush.msra.mxu0 %v1828_v9  ;;  %v187_v41 = vsub.f32 %v1851_v19, %v2867_v27  ;;  %v1899_v44 = vsub.f32 %v95_v25, %v1882_v33  ;;  %v96_v26 = vld [vmem:[#allocation5 + $0x78] sm:$0xff] }
  0x1e   :  { %322 = vmatpush.msra.mxu3 %v1828_v9  ;;  %v176_v43 = vand.u32 4294901760, %v175_v31  ;;  %v1901_v45 = vand.u32 4294901760, %v93_v34  ;;  %v1903_v46 = vand.u32 4294901760, %v91_v35  ;;  %v1907_v47 = vand.u32 4294901760, %v89_v40 }
  0x1f   :  { %165 = vmatpush.msra.mxu1 %v164_v36  ;;  %272 = vmatpush.msra.mxu2 %v1848_v18  ;;  %v182_v49 = vand.u32 4294901760, %v181_v38  ;;  %v193_v50 = vsub.f32 %v1854_v20, %v2865_v32  ;;  %v2863_v51 = vand.u32 4294901760, %v1890_v39  ;;  %v199_v54 = vsub.f32 %v1867_v28, %v2864_v42  ;;  %v98_v32 = vld [vmem:[#allocation5 + $0x88] sm:$0xff] }
  0x20   :  { %128 = vmatpush.msra.mxu0 %v1830_v10  ;;  %324 = vmatpush.msra.mxu3 %v1830_v10  ;;  %v1915_v52 = vsub.f32 %v93_v34, %v1901_v45  ;;  %v188_v55 = vand.u32 4294901760, %v187_v41  ;;  %v2862_v56 = vand.u32 4294901760, %v1899_v44  ;;  %v1925_v57 = vsub.f32 %v91_v35, %v1903_v46 }
  0x21   :  { %171 = vmatpush.msra.mxu1 %v170_v37  ;;  %275 = vmatpush.msra.mxu2 %v1851_v19  ;;  %v1927_v58 = vand.u32 4294901760, %v87_v48  ;;  %v1932_v61 = vsub.f32 %v89_v40, %v1907_v47  ;;  %v1934_v62 = vand.u32 4294901760, %v85_v53  ;;  %v194_v0 = vand.u32 4294901760, %v193_v50  ;;  %v106_v37 = vld [vmem:[#allocation5 + $0xc8] sm:$0xff] }
  0x22   :  { %130 = vmatpush.msra.mxu0 %v1832_v11  ;;  %326 = vmatpush.msra.mxu3 %v1832_v11  ;;  %v205_v1 = vsub.f32 %v1890_v39, %v2863_v51  ;;  %v2860_v2 = vand.u32 4294901760, %v1915_v52  ;;  %v200_v7 = vand.u32 4294901760, %v199_v54  ;;  %v1943_v8 = vand.u32 4294901760, %v83_v59 }
  0x23   :  { %177 = vmatpush.msra.mxu1 %v176_v43  ;;  %278 = vmatpush.msra.mxu2 %v1854_v20  ;;  %v1945_v12 = vand.u32 4294901760, %v112_v60  ;;  %v211_v25 = vsub.f32 %v1899_v44, %v2862_v56  ;;  %v2859_v29 = vand.u32 4294901760, %v1925_v57  ;;  %v1953_v30 = vsub.f32 %v87_v48, %v1927_v58  ;;  %v104_v48 = vld [vmem:[#allocation5 + $0xb8] sm:$0xff] }
  0x24   :  { %132 = vmatpush.msra.mxu0 %v1845_v17  ;;  %328 = vmatpush.msra.mxu3 %v1845_v17  ;;  %2899 = vst [vmem:[#allocation15_spill] sm:$0xff] %v1943_v8  ;;  %v1955_v31 = vand.u32 4294901760, %v110_v63  ;;  %v2861_v34 = vand.u32 4294901760, %v1932_v61  ;;  %v1961_v35 = vsub.f32 %v85_v53, %v1934_v62  ;;  %v1963_v36 = vand.u32 4294901760, %v81_v6 }
  0x25   :  { %183 = vmatpush.msra.mxu1 %v182_v49  ;;  %281 = vmatpush.msra.mxu2 %v1867_v28  ;;  %v206_v38 = vand.u32 4294901760, %v205_v1  ;;  %v217_v40 = vsub.f32 %v1915_v52, %v2860_v2  ;;  %v1970_v41 = vsub.f32 %v112_v60, %v1945_v12  ;;  %v1972_v43 = vand.u32 4294901760, %v108_v13  ;;  %v102_v1 = vld [vmem:[#allocation5 + $0xa8] sm:$0xff] }
  0x26   :  { %134 = vmatpush.msra.mxu0 %v1861_v24  ;;  %330 = vmatpush.msra.mxu3 %v1861_v24  ;;  %2900 = vst [vmem:[#allocation16_spill] sm:$0xff] %v1963_v36  ;;  %v1977_v49 = vsub.f32 %v83_v59, %v1943_v8  ;;  %v1980_v50 = vsub.f32 %v110_v63, %v1955_v31  ;;  %v212_v53 = vand.u32 4294901760, %v211_v25  ;;  %v1987_v60 = vand.u32 4294901760, %v106_v37 }
  0x27   :  { %189 = vmatpush.msra.mxu1 %v188_v55  ;;  %284 = vmatpush.msra.mxu2 %v1890_v39  ;;  %v223_v54 = vsub.f32 %v1925_v57, %v2859_v29  ;;  %v2866_v55 = vand.u32 4294901760, %v1953_v30  ;;  %v229_v59 = vsub.f32 %v1932_v61, %v2861_v34  ;;  %v2870_v63 = vand.u32 4294901760, %v1961_v35 }
  0x28   :  { %136 = vmatpush.msra.mxu0 %v1882_v33  ;;  %332 = vmatpush.msra.mxu3 %v1882_v33  ;;  %2901 = vst [vmem:[#allocation17_spill] sm:$0xff] %v1980_v50  ;;  %v1999_v25 = vsub.f32 %v81_v6, %v1963_v36  ;;  %v2869_v29 = vand.u32 4294901760, %v1970_v41  ;;  %v2003_v2 = vsub.f32 %v108_v13, %v1972_v43  ;;  %v2874_v34 = vand.u32 4294901760, %v1977_v49 }
  0x29   :  { %195 = vmatpush.msra.mxu1 %v194_v0  ;;  %287 = vmatpush.msra.mxu2 %v1899_v44  ;;  %v1995_v0 = vand.u32 4294901760, %v104_v48  ;;  %v2875_v56 = vand.u32 4294901760, %v1980_v50  ;;  %v235_v6 = vsub.f32 %v1953_v30, %v2866_v55  ;;  %v2014_v13 = vsub.f32 %v106_v37, %v1987_v60 }
  0x2a   :  { %138 = vmatpush.msra.mxu0 %v1901_v45  ;;  %334 = vmatpush.msra.mxu3 %v1901_v45  ;;  %2902 = vst [vmem:[#allocation18_spill] sm:$0xff] %v2003_v2  ;;  %v2016_v51 = vand.u32 4294901760, %v102_v1  ;;  %v230_v42 = vand.u32 4294901760, %v229_v59  ;;  %v504_v37 = vsub.f32 %v1970_v41, %v2869_v29  ;;  %v2878_v55 = vand.u32 4294901760, %v1999_v25 }
  0x2b   :  { %201 = vmatpush.msra.mxu1 %v200_v7  ;;  %290 = vmatpush.msra.mxu2 %v1915_v52  ;;  %v218_v7 = vand.u32 4294901760, %v217_v40  ;;  %v224_v40 = vand.u32 4294901760, %v223_v54  ;;  %2903 = vst [vmem:[#allocation19_spill] sm:$0xff] %v2014_v13  ;;  %v2024_v54 = vsub.f32 %v104_v48, %v1995_v0  ;;  %v247_v48 = vsub.f32 %v1977_v49, %v2874_v34 }
  0x2c   :  { %140 = vmatpush.msra.mxu0 %v1903_v46  ;;  %336 = vmatpush.msra.mxu3 %v1903_v46  ;;  %v236_v29 = vand.u32 4294901760, %v235_v6  ;;  %v2045_v23 = vsub.f32 %v102_v1, %v2016_v51  ;;  %v2047_v22 = vand.u32 4294901760, %v98_v32  ;;  %v2052_v59 = vand.u32 4294901760, %v96_v26 }
  0x2d   :  { %207 = vmatpush.msra.mxu1 %v206_v38  ;;  %293 = vmatpush.msra.mxu2 %v1925_v57  ;;  %v100_v38 = vld [vmem:[#allocation5 + $0x98] sm:$0xff]  ;;  %v505_v6 = vand.u32 4294901760, %v504_v37  ;;  %v253_v1 = vsub.f32 %v1999_v25, %v2878_v55  ;;  %v248_v34 = vand.u32 4294901760, %v247_v48  ;;  %v2905_v37 = vand.u32 4294901760, %v2014_v13 }
  0x2e   :  { %142 = vmatpush.msra.mxu0 %v1907_v47  ;;  %338 = vmatpush.msra.mxu3 %v1907_v47  ;;  %v2032_v27 = vand.u32 4294901760, %v100_v38  ;;  %v2906_v48 = vand.u32 4294901760, %v1835_v14  ;;  %v2908_v14 = vand.u32 4294901760, %v1839_v15 }
  0x2f   :  { %213 = vmatpush.msra.mxu1 %v212_v53  ;;  %296 = vmatpush.msra.mxu2 %v1932_v61  ;;  %v241_v53 = vsub.f32 %v1961_v35, %v2870_v63  ;;  %v522_v55 = vsub.f32 %v2014_v13, %v2905_v37  ;;  %v254_v37 = vand.u32 4294901760, %v253_v1  ;;  %v2910_v1 = vand.u32 4294901760, %v1843_v16 }
  0x30   :  { %144 = vmatpush.msra.mxu0 %v1927_v58  ;;  %340 = vmatpush.msra.mxu3 %v1927_v58  ;;  %v2911_v16 = vand.u32 4294901760, %v1848_v18  ;;  %v86_v18 = vld [vmem:[#allocation5 + $0x28] sm:$0xff] }
  0x31   :  { %219 = vmatpush.msra.mxu1 %v218_v7  ;;  %299 = vmatpush.msra.mxu2 %v1953_v30  ;;  %v510_v7 = vsub.f32 %v1980_v50, %v2875_v56  ;;  %v242_v21 = vand.u32 4294901760, %v241_v53  ;;  %v2904_v56 = vand.u32 4294901760, %v2003_v2  ;;  %v2062_v53 = vsub.f32 %v100_v38, %v2032_v27  ;;  %v92_v50 = vld [vmem:[#allocation5 + $0x58] sm:$0xff] }
  0x32   :  { %146 = vmatpush.msra.mxu0 %v1934_v62  ;;  %342 = vmatpush.msra.mxu3 %v1934_v62  ;;  %v2086_v13 = vand.u32 4294901760, %v92_v50 }
  0x33   :  { %225 = vmatpush.msra.mxu1 %v224_v40  ;;  %302 = vmatpush.msra.mxu2 %v1961_v35  ;;  %v94_v40 = vld [vmem:[#allocation5 + $0x68] sm:$0xff]  ;;  %v516_v63 = vsub.f32 %v2003_v2, %v2904_v56  ;;  %v2072_v56 = vsub.f32 %v98_v32, %v2047_v22  ;;  %v2083_v2 = vsub.f32 %v96_v26, %v2052_v59  ;;  %v539_v32 = vand.u32 4294901760, %v2062_v53 }
  0x34   :  { %148 = vmatpush.msra.mxu0 %v1943_v8  ;;  %344 = vmatpush.msra.mxu3 %v1943_v8  ;;  %v2074_v38 = vand.u32 4294901760, %v94_v40  ;;  %v2909_v26 = vand.u32 4294901760, %v2045_v23 }
  0x35   :  { %231 = vmatpush.msra.mxu1 %v230_v42  ;;  %305 = vmatpush.msra.mxu2 %v1977_v49  ;;  %v511_v42 = vand.u32 4294901760, %v510_v7  ;;  %v517_v8 = vand.u32 4294901760, %v516_v63  ;;  %v2886_v63 = vand.u32 4294901760, %v2072_v56 }
  0x36   :  { %150 = vmatpush.msra.mxu0 %v1963_v36  ;;  %346 = vmatpush.msra.mxu3 %v1963_v36  ;;  %v80_v36 = vld [vmem:[#allocation2] sm:$0xff] }
  0x37   :  { %237 = vmatpush.msra.mxu1 %v236_v29  ;;  %308 = vmatpush.msra.mxu2 %v1999_v25  ;;  %v2907_v29 = vand.u32 4294901760, %v2024_v54 }
  0x38   :  { %357 = vmatpush.msrb.mxu0 %v2906_v48  ;;  %506 = vmatpush.msrb.mxu3 %v505_v6  ;;  %v90_v48 = vld [vmem:[#allocation5 + $0x48] sm:$0xff]  ;;  %v2096_v6 = vsub.f32 %v94_v40, %v2074_v38  ;;  %v2110_v40 = vand.u32 4294901760, %v80_v36 }
  0x39   :  { %461 = vmatpush.msrb.mxu2 %v1945_v12  ;;  %v528_v7 = vsub.f32 %v2024_v54, %v2907_v29  ;;  %243 = vmatpush.msra.mxu1 %v242_v21  ;;  %v523_v29 = vand.u32 4294901760, %v522_v55  ;;  %v534_v21 = vsub.f32 %v2045_v23, %v2909_v26  ;;  %v2105_v55 = vand.u32 4294901760, %v90_v48  ;;  %v88_v26 = vld [vmem:[#allocation5 + $0x38] sm:$0xff] }
  0x3a   :  { %361 = vmatpush.msrb.mxu0 %v2908_v14  ;;  %512 = vmatpush.msrb.mxu3 %v511_v42  ;;  %v2885_v14 = vand.u32 4294901760, %v2083_v2  ;;  %v2108_v42 = vsub.f32 %v92_v50, %v2086_v13  ;;  %v2125_v50 = vand.u32 4294901760, %v88_v26 }
  0x3b   :  { %463 = vmatpush.msrb.mxu2 %v1955_v31  ;;  %249 = vmatpush.msra.mxu1 %v248_v34  ;;  %v529_v15 = vand.u32 4294901760, %v528_v7  ;;  %v540_v34 = vsub.f32 %v2062_v53, %v539_v32  ;;  %v546_v7 = vsub.f32 %v2072_v56, %v2886_v63  ;;  %v2913_v63 = vand.u32 4294901760, %v1854_v20 }
  0x3c   :  { %365 = vmatpush.msrb.mxu0 %v2910_v1  ;;  %518 = vmatpush.msrb.mxu3 %v517_v8  ;;  %v535_v8 = vand.u32 4294901760, %v534_v21  ;;  %v563_v1 = vand.u32 4294901760, %v2108_v42  ;;  %v2914_v20 = vand.u32 4294901760, %v1867_v28 }
  0x3d   :  { %465 = vmatpush.msrb.mxu2 %v1972_v43  ;;  %255 = vmatpush.msra.mxu1 %v254_v37  ;;  %v557_v37 = vand.u32 4294901760, %v2096_v6  ;;  %v541_v21 = vand.u32 4294901760, %v540_v34  ;;  %v2143_v34 = vand.u32 4294901760, %v86_v18 }
  0x3e   :  { %369 = vmatpush.msrb.mxu0 %v2911_v16  ;;  %524 = vmatpush.msrb.mxu3 %v523_v29  ;;  %v2912_v29 = vand.u32 4294901760, %v1851_v19  ;;  %v2131_v16 = vsub.f32 %v80_v36, %v2110_v40  ;;  %v547_v19 = vand.u32 4294901760, %v546_v7 }
  0x3f   :  { %424 = vmatpush.msrb.mxu1 %v1822_v3  ;;  %467 = vmatpush.msrb.mxu2 %v1987_v60  ;;  %v552_v3 = vsub.f32 %v2083_v2, %v2885_v14  ;;  %v84_v14 = vld [vmem:[#allocation5 + $0x18] sm:$0xff] }
  0x40   :  { %373 = vmatpush.msrb.mxu0 %v2912_v29  ;;  %530 = vmatpush.msrb.mxu3 %v529_v15  ;;  %v558_v15 = vsub.f32 %v2096_v6, %v557_v37  ;;  %v2157_v7 = vand.u32 4294901760, %v2131_v16 }
  0x41   :  { %426 = vmatpush.msrb.mxu1 %v1824_v4  ;;  %469 = vmatpush.msrb.mxu2 %v1995_v0  ;;  %v2134_v4 = vsub.f32 %v90_v48, %v2105_v55  ;;  %v553_v36 = vand.u32 4294901760, %v552_v3  ;;  %v82_v48 = vld [vmem:[#allocation5 + $0x8] sm:$0xff]  ;;  %v2166_v3 = vsub.f32 %v86_v18, %v2143_v34 }
  0x42   :  { %377 = vmatpush.msrb.mxu0 %v2913_v63  ;;  %536 = vmatpush.msrb.mxu3 %v535_v8  ;;  %v564_v63 = vsub.f32 %v2108_v42, %v563_v1  ;;  %v559_v28 = vand.u32 4294901760, %v558_v15  ;;  %v2168_v29 = vand.u32 4294901760, %v82_v48  ;;  %v154_v18 = vsub.f32 %v2131_v16, %v2157_v7 }
  0x43   :  { %428 = vmatpush.msrb.mxu1 %v1826_v5  ;;  %471 = vmatpush.msrb.mxu2 %v2016_v51  ;;  %v2148_v5 = vsub.f32 %v88_v26, %v2125_v50  ;;  %v569_v8 = vand.u32 4294901760, %v2134_v4  ;;  %v2915_v26 = vand.u32 4294901760, %v1890_v39 }
  0x44   :  { %381 = vmatpush.msrb.mxu0 %v2914_v20  ;;  %542 = vmatpush.msrb.mxu3 %v541_v21  ;;  %v565_v20 = vand.u32 4294901760, %v564_v63  ;;  %v2189_v15 = vsub.f32 %v82_v48, %v2168_v29 }
  0x45   :  { %430 = vmatpush.msrb.mxu1 %v1828_v9  ;;  %473 = vmatpush.msrb.mxu2 %v2032_v27  ;;  %v2159_v9 = vand.u32 4294901760, %v84_v14  ;;  %v575_v21 = vand.u32 4294901760, %v2148_v5  ;;  %v570_v39 = vsub.f32 %v2134_v4, %v569_v8 }
  0x46   :  { %385 = vmatpush.msrb.mxu0 %v2915_v26  ;;  %548 = vmatpush.msrb.mxu3 %v547_v19  ;;  %v593_v48 = vand.u32 4294901760, %v2189_v15 }
  0x47   :  { %432 = vmatpush.msrb.mxu1 %v1830_v10  ;;  %475 = vmatpush.msrb.mxu2 %v2047_v22  ;;  %v2916_v10 = vand.u32 4294901760, %v1899_v44  ;;  %v2181_v19 = vsub.f32 %v84_v14, %v2159_v9  ;;  %v581_v44 = vand.u32 4294901760, %v2166_v3  ;;  %v576_v14 = vsub.f32 %v2148_v5, %v575_v21 }
  0x48   :  { %554 = vmatpush.msrb.mxu3 %v553_v36  ;;  %v2198_v36 = vand.u32 4294901760, %v154_v18  ;;  %311 = vmatmul.f32.vlgmr.msra.gmra.mxu2 %v2131_v16 }
  0x49   :  { %434 = vmatpush.msrb.mxu1 %v1832_v11  ;;  %477 = vmatpush.msrb.mxu2 %v2052_v59  ;;  %v2917_v11 = vand.u32 4294901760, %v1915_v52  ;;  %v571_v52 = vand.u32 4294901760, %v570_v39  ;;  %v587_v63 = vand.u32 4294901760, %v2181_v19  ;;  %v577_v26 = vand.u32 4294901760, %v576_v14  ;;  %v2925_v39 = vld [vmem:[#allocation15_spill] sm:$0xff] }
  0x4a   :  { %389 = vmatpush.msrb.mxu0 %v2916_v10  ;;  %560 = vmatpush.msrb.mxu3 %v559_v28  ;;  %v594_v28 = vsub.f32 %v2189_v15, %v593_v48  ;;  %v2921_v10 = vand.u32 4294901760, %v1961_v35  ;;  %v2924_v35 = vand.u32 4294901760, %v1999_v25  ;;  %v2929_v25 = vld [vmem:[#allocation18_spill] sm:$0xff] }
  0x4b   :  { %436 = vmatpush.msrb.mxu1 %v1845_v17  ;;  %479 = vmatpush.msrb.mxu2 %v2074_v38  ;;  %v2918_v17 = vand.u32 4294901760, %v1925_v57  ;;  %v582_v57 = vsub.f32 %v2166_v3, %v581_v44  ;;  %v2930_v18 = vand.u32 4294901760, %v2929_v25 }
  0x4c   :  { %393 = vmatpush.msrb.mxu0 %v2917_v11  ;;  %566 = vmatpush.msrb.mxu3 %v565_v20  ;;  %v595_v20 = vand.u32 4294901760, %v594_v28  ;;  %v2415_v28 = vld [vmem:[#allocation7] sm:$0x3] }
  0x4d   :  { %438 = vmatpush.msrb.mxu1 %v1861_v24  ;;  %481 = vmatpush.msrb.mxu2 %v2086_v13  ;;  %v2919_v24 = vand.u32 4294901760, %v1932_v61  ;;  %v2920_v61 = vand.u32 4294901760, %v1953_v30  ;;  %v2922_v30 = vand.u32 4294901760, %v1977_v49 }
  0x4e   :  { %397 = vmatpush.msrb.mxu0 %v2918_v17  ;;  %572 = vmatpush.msrb.mxu3 %v571_v52 }
  0x4f   :  { %440 = vmatpush.msrb.mxu1 %v1882_v33  ;;  %483 = vmatpush.msrb.mxu2 %v2105_v55  ;;  %v588_v33 = vsub.f32 %v2181_v19, %v587_v63 }
  0x50   :  { %401 = vmatpush.msrb.mxu0 %v2919_v24  ;;  %350 = vmatmul.f32.vlgmr.msra.gmra.mxu3 %v2157_v7  ;;  %v896_v24 = vld [vmem:[#allocation8 + $0x38] sm:$0xff] }
  0x51   :  { %442 = vmatpush.msrb.mxu1 %v1901_v45  ;;  %485 = vmatpush.msrb.mxu2 %v2125_v50  ;;  %v583_v45 = vand.u32 4294901760, %v582_v57 }
  0x52   :  { %156 = vmatmul.f32.vlgmr.msra.gmra.mxu0 %v2198_v36  ;;  %578 = vmatpush.msrb.mxu3 %v577_v26 }
  0x53   :  { %444 = vmatpush.msrb.mxu1 %v1903_v46  ;;  %405 = vmatpush.msrb.mxu0 %v2920_v61  ;;  %v589_v46 = vand.u32 4294901760, %v588_v33  ;;  %v2410_v33 = vand.u32 4294901760, %v896_v24 }
  0x54   :  { %487 = vmatpush.msrb.mxu2 %v2143_v34  ;;  %257 = vmatmul.f32.vlgmr.msra.gmra.mxu1 %v2110_v40 }
  0x55   :  { %446 = vmatpush.msrb.mxu1 %v1907_v47  ;;  %409 = vmatpush.msrb.mxu0 %v2921_v10  ;;  %v2923_v47 = vand.u32 4294901760, %v1970_v41 }
  0x56   :  { %489 = vmatpush.msrb.mxu2 %v2159_v9  ;;  %584 = vmatpush.msrb.mxu3 %v583_v45  ;;  %v895_v45 = vld [vmem:[#allocation8 + $0x30] sm:$0xff] }
  0x57   :  { %448 = vmatpush.msrb.mxu1 %v1927_v58  ;;  %413 = vmatpush.msrb.mxu0 %v2922_v30  ;;  %v2926_v58 = vld [vmem:[#allocation17_spill] sm:$0xff] }
  0x58   :  { %491 = vmatpush.msrb.mxu2 %v2168_v29  ;;  %590 = vmatpush.msrb.mxu3 %v589_v46  ;;  %v2927_v49 = vand.u32 4294901760, %v2926_v58 }
  0x59   :  { %450 = vmatpush.msrb.mxu1 %v1934_v62  ;;  %417 = vmatpush.msrb.mxu0 %v2924_v35  ;;  %v2928_v62 = vld [vmem:[#allocation16_spill] sm:$0xff]  ;;  %v894_v35 = vld [vmem:[#allocation8 + $0x28] sm:$0xff] }
  0x5a   :  { %698 = vmatpush.msra.mxu2 %v2923_v47  ;;  %596 = vmatpush.msrb.mxu3 %v595_v20  ;;  %v2422_v20 = vsub.f32 %v896_v24, %v2410_v33  ;;  %v2426_v47 = vand.u32 4294901760, %v895_v45 }
  0x5b   :  { %452 = vmatpush.msrb.mxu1 %v2925_v39  ;;  %419 = vmatmul.f32.vlgmr.msrb.gmra.mxu0 %v2110_v40 }
  0x5c   :  { %604 = vmatpush.msra.mxu0 %v1970_v41  ;;  %702 = vmatpush.msra.mxu2 %v2927_v49  ;;  %v2931_v41 = vld [vmem:[#allocation19_spill] sm:$0xff]  ;;  %v1016_v49 = vand.u32 4294901760, %v2422_v20 }
  0x5d   :  { %765 = vmatpush.msra.mxu3 %v1945_v12  ;;  %454 = vmatpush.msrb.mxu1 %v2928_v62  ;;  %v2932_v11 = vand.u32 4294901760, %v2931_v41  ;;  %v2432_v62 = vand.u32 4294901760, %v894_v35 }
  0x5e   :  { %456 = vmatmul.f32.vlgmr.msrb.gmra.mxu1 %v2110_v40  ;;  %607 = vmatpush.msra.mxu0 %v2926_v58 }
  0x5f   :  { %657 = vmatpush.msra.mxu1 %v1945_v12  ;;  %706 = vmatpush.msra.mxu2 %v2930_v18  ;;  %v2933_v12 = vand.u32 4294901760, %v2024_v54  ;;  %v2439_v18 = vsub.f32 %v895_v45, %v2426_v47 }
  0x60   :  { %767 = vmatpush.msra.mxu3 %v1955_v31  ;;  %610 = vmatpush.msra.mxu0 %v2929_v25  ;;  %v115_v25 = vperm.slane %v2415_v28, 0 }
  0x61   :  { %659 = vmatpush.msra.mxu1 %v1955_v31  ;;  %710 = vmatpush.msra.mxu2 %v2932_v11  ;;  %v2934_v31 = vand.u32 4294901760, %v2045_v23 }
  0x62   :  { %769 = vmatpush.msra.mxu3 %v1972_v43  ;;  %613 = vmatpush.msra.mxu0 %v2931_v41  ;;  %v893_v41 = vld [vmem:[#allocation8 + $0x20] sm:$0xff] }
  0x63   :  { %661 = vmatpush.msra.mxu1 %v1972_v43  ;;  %714 = vmatpush.msra.mxu2 %v2933_v12  ;;  %v2935_v43 = vand.u32 4294901760, %v2072_v56  ;;  %v1017_v12 = vsub.f32 %v2422_v20, %v1016_v49 }
  0x64   :  { %771 = vmatpush.msra.mxu3 %v1987_v60  ;;  %616 = vmatpush.msra.mxu0 %v2024_v54 }
  0x65   :  { %663 = vmatpush.msra.mxu1 %v1987_v60  ;;  %718 = vmatpush.msra.mxu2 %v2934_v31  ;;  %v2445_v31 = vsub.f32 %v894_v35, %v2432_v62  ;;  %v889_v35 = vld [vmem:[#allocation8] sm:$0xff] }
  0x66   :  { %773 = vmatpush.msra.mxu3 %v1995_v0  ;;  %619 = vmatpush.msra.mxu0 %v2045_v23  ;;  %v2936_v23 = vand.u32 4294901760, %v2083_v2 }
  0x67   :  { %665 = vmatpush.msra.mxu1 %v1995_v0  ;;  %722 = vmatpush.msra.mxu2 %v539_v32  ;;  %v902_v0 = vld [vmem:[#allocation8 + $0x68] sm:$0xff] }
  0x68   :  { %775 = vmatpush.msra.mxu3 %v2016_v51  ;;  %622 = vmatpush.msra.mxu0 %v2062_v53  ;;  %v901_v53 = vld [vmem:[#allocation8 + $0x60] sm:$0xff] }
  0x69   :  { %667 = vmatpush.msra.mxu1 %v2016_v51  ;;  %726 = vmatpush.msra.mxu2 %v2935_v43  ;;  %v903_v51 = vld [vmem:[#allocation8 + $0x70] sm:$0xff]  ;;  %v2447_v43 = vand.u32 4294901760, %v893_v41 }
  0x6a   :  { %777 = vmatpush.msra.mxu3 %v2032_v27  ;;  %625 = vmatpush.msra.mxu0 %v2072_v56  ;;  %v2332_v60 = vand.u32 4294901760, %v903_v51 }
  0x6b   :  { %669 = vmatpush.msra.mxu1 %v2032_v27  ;;  %730 = vmatpush.msra.mxu2 %v2936_v23  ;;  %v1022_v23 = vand.u32 4294901760, %v2439_v18 }
  0x6c   :  { %779 = vmatpush.msra.mxu3 %v2047_v22  ;;  %628 = vmatpush.msra.mxu0 %v2083_v2  ;;  %v2338_v54 = vsub.f32 %v903_v51, %v2332_v60 }
  0x6d   :  { %671 = vmatpush.msra.mxu1 %v2047_v22  ;;  %734 = vmatpush.msra.mxu2 %v557_v37  ;;  %v904_v22 = vld [vmem:[#allocation8 + $0x78] sm:$0xff] }
  0x6e   :  { %781 = vmatpush.msra.mxu3 %v2052_v59  ;;  %631 = vmatpush.msra.mxu0 %v2096_v6  ;;  %v2326_v27 = vand.u32 4294901760, %v904_v22  ;;  %v2352_v6 = vand.u32 4294901760, %v901_v53 }
  0x6f   :  { %673 = vmatpush.msra.mxu1 %v2052_v59  ;;  %738 = vmatpush.msra.mxu2 %v563_v1  ;;  %v2340_v59 = vand.u32 4294901760, %v902_v0 }
  0x70   :  { %783 = vmatpush.msra.mxu3 %v2074_v38  ;;  %634 = vmatpush.msra.mxu0 %v2108_v42  ;;  %v2330_v2 = vsub.f32 %v904_v22, %v2326_v27  ;;  %v892_v22 = vld [vmem:[#allocation8 + $0x18] sm:$0xff] }
  0x71   :  { %675 = vmatpush.msra.mxu1 %v2074_v38  ;;  %742 = vmatpush.msra.mxu2 %v569_v8  ;;  %v974_v38 = vand.u32 4294901760, %v2338_v54  ;;  %v2350_v32 = vsub.f32 %v902_v0, %v2340_v59  ;;  %v1018_v0 = vand.u32 4294901760, %v1017_v12 }
  0x72   :  { %785 = vmatpush.msra.mxu3 %v2086_v13  ;;  %497 = vmatmul.f32.vlgmr.msrb.gmra.mxu2 %v2198_v36 }
  0x73   :  { %637 = vmatpush.msra.mxu0 %v2134_v4  ;;  %677 = vmatpush.msra.mxu1 %v2086_v13  ;;  %v968_v13 = vand.u32 4294901760, %v2330_v2  ;;  %v980_v37 = vand.u32 4294901760, %v2350_v32 }
  0x74   :  { %746 = vmatpush.msra.mxu2 %v575_v21  ;;  %787 = vmatpush.msra.mxu3 %v2105_v55 }
  0x75   :  { %598 = vmatmul.f32.vlgmr.msrb.gmra.mxu3 %v2110_v40  ;;  %640 = vmatpush.msra.mxu0 %v2148_v5  ;;  %v969_v56 = vsub.f32 %v2330_v2, %v968_v13 }
  0x76   :  { %679 = vmatpush.msra.mxu1 %v2105_v55  ;;  %750 = vmatpush.msra.mxu2 %v581_v44  ;;  %v900_v55 = vld [vmem:[#allocation8 + $0x58] sm:$0xff] }
  0x77   :  { %789 = vmatpush.msra.mxu3 %v2125_v50  ;;  %643 = vmatpush.msra.mxu0 %v2166_v3  ;;  %v970_v42 = vand.u32 4294901760, %v969_v56  ;;  %v2365_v1 = vand.u32 4294901760, %v900_v55  ;;  %v2455_v56 = vsub.f32 %v893_v41, %v2447_v43  ;;  %v2493_v41 = vand.u32 4294901760, %v889_v35 }
  0x78   :  { %681 = vmatpush.msra.mxu1 %v2125_v50  ;;  %754 = vmatpush.msra.mxu2 %v587_v63  ;;  %v2362_v50 = vsub.f32 %v901_v53, %v2352_v6  ;;  %v1028_v53 = vand.u32 4294901760, %v2445_v31 }
  0x79   :  { %791 = vmatpush.msra.mxu3 %v2143_v34  ;;  %646 = vmatpush.msra.mxu0 %v2181_v19 }
  0x7a   :  { %683 = vmatpush.msra.mxu1 %v2143_v34  ;;  %758 = vmatpush.msra.mxu2 %v593_v48  ;;  %v981_v34 = vsub.f32 %v2350_v32, %v980_v37  ;;  %v986_v5 = vand.u32 4294901760, %v2362_v50 }
  0x7b   :  { %793 = vmatpush.msra.mxu3 %v2159_v9  ;;  %760 = vmatmul.f32.vlgmr.msra.gmra.mxu2 %v2110_v40 }
  0x7c   :  { %649 = vmatpush.msra.mxu0 %v2189_v15  ;;  %685 = vmatpush.msra.mxu1 %v2159_v9  ;;  %v898_v9 = vld [vmem:[#allocation8 + $0x48] sm:$0xff]  ;;  %v982_v3 = vand.u32 4294901760, %v981_v34  ;;  %v897_v15 = vld [vmem:[#allocation8 + $0x40] sm:$0xff]  ;;  %v1034_v34 = vand.u32 4294901760, %v2455_v56 }
  0x7d   :  { %795 = vmatpush.msra.mxu3 %v2168_v29  ;;  %652 = vmatmul.f32.vlgmr.msra.gmra.mxu0 %v2131_v16  ;;  %v899_v16 = vld [vmem:[#allocation8 + $0x50] sm:$0xff]  ;;  %v2385_v19 = vand.u32 4294901760, %v898_v9  ;;  %v2395_v36 = vand.u32 4294901760, %v897_v15 }
  0x7e   :  { %797 = vmatmul.f32.vlgmr.msra.gmra.mxu3 %v2110_v40  ;;  %687 = vmatpush.msra.mxu1 %v2168_v29  ;;  %v975_v40 = vsub.f32 %v2338_v54, %v974_v38  ;;  %v2372_v8 = vand.u32 4294901760, %v899_v16  ;;  %v987_v29 = vsub.f32 %v2362_v50, %v986_v5 }
  0x7f   :  { %691 = vmatmul.f32.vlgmr.msra.gmra.mxu1 %v2157_v7  ;;  %926 = vmatpush.msrb.mxu0 %v2326_v27  ;;  %v2376_v7 = vsub.f32 %v900_v55, %v2365_v1  ;;  %v2393_v52 = vsub.f32 %v898_v9, %v2385_v19  ;;  %v2408_v26 = vsub.f32 %v897_v15, %v2395_v36  ;;  %v2457_v55 = vand.u32 4294901760, %v892_v22  ;;  %v890_v15 = vld [vmem:[#allocation8 + $0x8] sm:$0xff] }
  0x80   :  { %1122 = vmatpush.msrb.mxu3 %v2326_v27  ;;  %1069 = vmatpush.msrb.mxu2 %v2330_v2  ;;  %v976_v4 = vand.u32 4294901760, %v975_v40  ;;  %v2383_v21 = vsub.f32 %v899_v16, %v2372_v8  ;;  %v988_v14 = vand.u32 4294901760, %v987_v29  ;;  %v1023_v40 = vsub.f32 %v2439_v18, %v1022_v23  ;;  %v891_v16 = vld [vmem:[#allocation8 + $0x10] sm:$0xff] }
  0x81   :  { %928 = vmatpush.msrb.mxu0 %v2332_v60  ;;  %971 = vmatpush.msrb.mxu1 %v970_v42  ;;  %v992_v44 = vand.u32 4294901760, %v2376_v7  ;;  %v1004_v48 = vand.u32 4294901760, %v2393_v52  ;;  %v1010_v30 = vand.u32 4294901760, %v2408_v26  ;;  %v2470_v9 = vsub.f32 %v892_v22, %v2457_v55 }
  0x82   :  { %1124 = vmatpush.msrb.mxu3 %v2332_v60  ;;  %1072 = vmatpush.msrb.mxu2 %v2338_v54  ;;  %v998_v17 = vand.u32 4294901760, %v2383_v21  ;;  %v1024_v29 = vand.u32 4294901760, %v1023_v40  ;;  %v918_v54 = vld [vmem:[#allocation8 + $0xe8] sm:$0xff] }
  0x83   :  { %930 = vmatpush.msrb.mxu0 %v2340_v59  ;;  %977 = vmatpush.msrb.mxu1 %v976_v4  ;;  %v993_v63 = vsub.f32 %v2376_v7, %v992_v44  ;;  %v1005_v46 = vsub.f32 %v2393_v52, %v1004_v48  ;;  %v1011_v58 = vsub.f32 %v2408_v26, %v1010_v30 }
  0x84   :  { %1126 = vmatpush.msrb.mxu3 %v2340_v59  ;;  %1075 = vmatpush.msrb.mxu2 %v2350_v32  ;;  %v999_v57 = vsub.f32 %v2383_v21, %v998_v17  ;;  %v1029_v4 = vsub.f32 %v2445_v31, %v1028_v53 }
  0x85   :  { %932 = vmatpush.msrb.mxu0 %v2352_v6  ;;  %983 = vmatpush.msrb.mxu1 %v982_v3  ;;  %v994_v61 = vand.u32 4294901760, %v993_v63  ;;  %v1006_v39 = vand.u32 4294901760, %v1005_v46  ;;  %v1012_v11 = vand.u32 4294901760, %v1011_v58  ;;  %v2472_v3 = vand.u32 4294901760, %v891_v16 }
  0x86   :  { %1128 = vmatpush.msrb.mxu3 %v2352_v6  ;;  %1078 = vmatpush.msrb.mxu2 %v2362_v50  ;;  %v1000_v10 = vand.u32 4294901760, %v999_v57  ;;  %v1030_v24 = vand.u32 4294901760, %v1029_v4  ;;  %v1035_v57 = vsub.f32 %v2455_v56, %v1034_v34  ;;  %v2487_v46 = vand.u32 4294901760, %v890_v15 }
  0x87   :  { %934 = vmatpush.msrb.mxu0 %v2365_v1  ;;  %989 = vmatpush.msrb.mxu1 %v988_v14  ;;  %v2482_v45 = vsub.f32 %v891_v16, %v2472_v3 }
  0x88   :  { %1130 = vmatpush.msrb.mxu3 %v2365_v1  ;;  %1081 = vmatpush.msrb.mxu2 %v2376_v7  ;;  %v2499_v22 = vsub.f32 %v890_v15, %v2487_v46 }
  0x89   :  { %936 = vmatpush.msrb.mxu0 %v2372_v8  ;;  %995 = vmatpush.msrb.mxu1 %v994_v61  ;;  %v1040_v61 = vand.u32 4294901760, %v2470_v9 }
  0x8a   :  { %1132 = vmatpush.msrb.mxu3 %v2372_v8  ;;  %1084 = vmatpush.msrb.mxu2 %v2383_v21  ;;  %v1052_v16 = vand.u32 4294901760, %v2499_v22 }
  0x8b   :  { %938 = vmatpush.msrb.mxu0 %v2385_v19  ;;  %1001 = vmatpush.msrb.mxu1 %v1000_v10  ;;  %v1041_v58 = vsub.f32 %v2470_v9, %v1040_v61 }
  0x8c   :  { %1134 = vmatpush.msrb.mxu3 %v2385_v19  ;;  %1087 = vmatpush.msrb.mxu2 %v2393_v52 }
  0x8d   :  { %940 = vmatpush.msrb.mxu0 %v2395_v36  ;;  %1007 = vmatpush.msrb.mxu1 %v1006_v39  ;;  %v1036_v39 = vand.u32 4294901760, %v1035_v57 }
  0x8e   :  { %1136 = vmatpush.msrb.mxu3 %v2395_v36  ;;  %1090 = vmatpush.msrb.mxu2 %v2408_v26 }
  0x8f   :  { %942 = vmatpush.msrb.mxu0 %v2410_v33  ;;  %1013 = vmatpush.msrb.mxu1 %v1012_v11 }
  0x90   :  { %1138 = vmatpush.msrb.mxu3 %v2410_v33  ;;  %1093 = vmatpush.msrb.mxu2 %v2422_v20 }
  0x91   :  { %944 = vmatpush.msrb.mxu0 %v2426_v47  ;;  %1019 = vmatpush.msrb.mxu1 %v1018_v0 }
  0x92   :  { %1140 = vmatpush.msrb.mxu3 %v2426_v47  ;;  %1096 = vmatpush.msrb.mxu2 %v2439_v18 }
  0x93   :  { %946 = vmatpush.msrb.mxu0 %v2432_v62  ;;  %1025 = vmatpush.msrb.mxu1 %v1024_v29 }
  0x94   :  { %1142 = vmatpush.msrb.mxu3 %v2432_v62  ;;  %1099 = vmatpush.msrb.mxu2 %v2445_v31 }
  0x95   :  { %948 = vmatpush.msrb.mxu0 %v2447_v43  ;;  %1031 = vmatpush.msrb.mxu1 %v1030_v24  ;;  %v920_v24 = vld [vmem:[#allocation8 + $0xf8] sm:$0xff] }
  0x96   :  { %1144 = vmatpush.msrb.mxu3 %v2447_v43  ;;  %1102 = vmatpush.msrb.mxu2 %v2455_v56  ;;  %v2524_v2 = vand.u32 4294901760, %v920_v24  ;;  %v116_v56 = vperm.slane %v2415_v28, 1 }
  0x97   :  { %950 = vmatpush.msrb.mxu0 %v2457_v55  ;;  %1037 = vmatpush.msrb.mxu1 %v1036_v39 }
  0x98   :  { %1146 = vmatpush.msrb.mxu3 %v2457_v55  ;;  %1105 = vmatpush.msrb.mxu2 %v2470_v9 }
  0x99   :  { %952 = vmatpush.msrb.mxu0 %v2472_v3 }
  0x9a   :  { %1148 = vmatpush.msrb.mxu3 %v2472_v3  ;;  %1108 = vmatpush.msrb.mxu2 %v2482_v45 }
  0x9b   :  { %954 = vmatpush.msrb.mxu0 %v2487_v46 }
  0x9c   :  { %1150 = vmatpush.msrb.mxu3 %v2487_v46  ;;  %1111 = vmatpush.msrb.mxu2 %v2499_v22 }
  0x9d   :  { %956 = vmatpush.msrb.mxu0 %v2493_v41 }
  0x9e   :  { %1152 = vmatpush.msrb.mxu3 %v2493_v41 }
  0x9f   :  { %1163 = vmatpush.msra.mxu0 %v968_v13 }
  0xa1   :  { %1167 = vmatpush.msra.mxu0 %v974_v38 }
  0xa3   :  { %1171 = vmatpush.msra.mxu0 %v980_v37  ;;  %v2547_v37 = vand.u32 4294901760, %v918_v54 }
  0xa5   :  { %1175 = vmatpush.msra.mxu0 %v986_v5 }
  0xa7   :  { %1179 = vmatpush.msra.mxu0 %v992_v44 }
  0xa9   :  { %1183 = vmatpush.msra.mxu0 %v998_v17 }
  0xab   :  { %1187 = vmatpush.msra.mxu0 %v1004_v48 }
  0xad   :  { %1191 = vmatpush.msra.mxu0 %v1010_v30 }
  0xaf   :  { %1195 = vmatpush.msra.mxu0 %v1016_v49 }
  0xb1   :  { %1199 = vmatpush.msra.mxu0 %v1022_v23 }
  0xb3   :  { %1203 = vmatpush.msra.mxu0 %v1028_v53 }
  0xb5   :  { %1207 = vmatpush.msra.mxu0 %v1034_v34 }
  0xb7   :  { %1211 = vmatpush.msra.mxu0 %v1040_v61 }
  0xcb   :  { %v312_v63 = vpop.f32.mrf.mxu2 }
  0xcf   :  { %v157_v51 = vpop.f32.mrf.mxu0 }
  0xd0   :  { %v158_v42 = vadd.f32 %v157_v51, %v115_v25  ;;  %v1046_v25 = vand.u32 4294901760, %v2482_v45  ;;  %v1042_v51 = vand.u32 4294901760, %v1041_v58 }
  0xd1   :  { %v258_v14 = vpop.f32.mrf.mxu1 }
  0xd2   :  { %v259_v10 = vadd.f32 %v258_v14, %v158_v42  ;;  %v1047_v0 = vsub.f32 %v2482_v45, %v1046_v25  ;;  %v2505_v42 = vsub.f32 %v889_v35, %v2493_v41  ;;  %1043 = vmatpush.msrb.mxu1 %v1042_v51  ;;  %v919_v35 = vld [vmem:[#allocation8 + $0xf0] sm:$0xff]  ;;  %1215 = vmatpush.msra.mxu0 %v1046_v25 }
  0xd3   :  { %v351_v12 = vpop.f32.mrf.mxu3 }
  0xd4   :  { %v313_v11 = vadd.f32 %v312_v63, %v259_v10  ;;  %v1048_v29 = vand.u32 4294901760, %v1047_v0  ;;  %v1058_v15 = vand.u32 4294901760, %v2505_v42  ;;  %v1053_v63 = vsub.f32 %v2499_v22, %v1052_v16  ;;  %1114 = vmatpush.msrb.mxu2 %v2505_v42  ;;  %v917_v0 = vld [vmem:[#allocation8 + $0xe0] sm:$0xff]  ;;  %1219 = vmatpush.msra.mxu0 %v1052_v16 }
  0xd5   :  { %v2558_v5 = vand.u32 4294901760, %v917_v0 }
  0xd6   :  { %v352_v40 = vadd.f32 %v351_v12, %v313_v11  ;;  %v1059_v57 = vsub.f32 %v2505_v42, %v1058_v15  ;;  %1049 = vmatpush.msrb.mxu1 %v1048_v29  ;;  %v1054_v10 = vand.u32 4294901760, %v1053_v63  ;;  %v2532_v11 = vsub.f32 %v920_v24, %v2524_v2  ;;  %1267 = vmatpush.msra.mxu2 %v2524_v2 }
  0xd7   :  { %v2534_v12 = vand.u32 4294901760, %v919_v35  ;;  %v2561_v29 = vsub.f32 %v918_v54, %v2547_v37  ;;  %v2573_v7 = vsub.f32 %v917_v0, %v2558_v5  ;;  %v914_v0 = vld [vmem:[#allocation8 + $0xc8] sm:$0xff]  ;;  %1223 = vmatpush.msra.mxu0 %v1058_v15 }
  0xd8   :  { %v420_v4 = vpop.f32.mrf.mxu0  ;;  %v1060_v58 = vand.u32 4294901760, %v1059_v57  ;;  %1055 = vmatpush.msrb.mxu1 %v1054_v10  ;;  %v1309_v51 = vand.u32 4294901760, %v2532_v11 }
  0xd9   :  { %v421_v14 = vadd.f32 %v420_v4, %v352_v40  ;;  %v2544_v32 = vsub.f32 %v919_v35, %v2534_v12  ;;  %1269 = vmatpush.msra.mxu2 %v2534_v12  ;;  %v1321_v44 = vand.u32 4294901760, %v2561_v29  ;;  %v1327_v21 = vand.u32 4294901760, %v2573_v7 }
  0xda   :  { %1061 = vmatpush.msrb.mxu1 %v1060_v58  ;;  %v1310_v4 = vsub.f32 %v2532_v11, %v1309_v51 }
  0xdb   :  { %v457_v13 = vpop.f32.mrf.mxu1  ;;  %v1315_v50 = vand.u32 4294901760, %v2544_v32  ;;  %1271 = vmatpush.msra.mxu2 %v2547_v37  ;;  %v1322_v17 = vsub.f32 %v2561_v29, %v1321_v44 }
  0xdc   :  { %v2527_v39 = vadd.f32 %v457_v13, %v421_v14  ;;  %1230 = vmatpush.msra.mxu1 %v2326_v27  ;;  %v916_v14 = vld [vmem:[#allocation8 + $0xd8] sm:$0xff]  ;;  %v1311_v27 = vand.u32 4294901760, %v1310_v4  ;;  %v915_v13 = vld [vmem:[#allocation8 + $0xd0] sm:$0xff]  ;;  %v1328_v4 = vsub.f32 %v2573_v7, %v1327_v21 }
  0xdd   :  { %v1316_v24 = vsub.f32 %v2544_v32, %v1315_v50  ;;  %v2576_v57 = vand.u32 4294901760, %v916_v14  ;;  %1273 = vmatpush.msra.mxu2 %v2558_v5  ;;  %v2591_v54 = vand.u32 4294901760, %v915_v13  ;;  %v1323_v52 = vand.u32 4294901760, %v1322_v17  ;;  %v912_v17 = vld [vmem:[#allocation8 + $0xb8] sm:$0xff] }
  0xde   :  { %v2538_v38 = vmul.f32 0.70710677, %v2527_v39  ;;  %1232 = vmatpush.msra.mxu1 %v2332_v60  ;;  %1312 = vmatpush.msra.mxu3 %v1311_v27  ;;  %v2598_v27 = vand.u32 4294901760, %v914_v0 }
  0xdf   :  { %v1317_v35 = vand.u32 4294901760, %v1316_v24  ;;  %v2589_v58 = vsub.f32 %v916_v14, %v2576_v57  ;;  %1275 = vmatpush.msra.mxu2 %v2576_v57  ;;  %v2604_v14 = vsub.f32 %v915_v13, %v2591_v54  ;;  %v913_v24 = vld [vmem:[#allocation8 + $0xc0] sm:$0xff] }
  0xe0   :  { %v805_v40 = vmul.f32 %v2538_v38, %v2538_v38  ;;  %1234 = vmatpush.msra.mxu1 %v2340_v59  ;;  %v2619_v13 = vand.u32 4294901760, %v913_v24 }
  0xe1   :  { %1318 = vmatpush.msra.mxu3 %v1317_v35  ;;  %v2898_v48 = vand.u32 4294901760, %v2589_v58  ;;  %1277 = vmatpush.msra.mxu2 %v2591_v54  ;;  %v2611_v35 = vsub.f32 %v914_v0, %v2598_v27  ;;  %v2897_v30 = vand.u32 4294901760, %v2604_v14  ;;  %v2623_v0 = vand.u32 4294901760, %v912_v17 }
  0xe2   :  { %v2564_v63 = vmin.f32 %v805_v40, 16.0  ;;  %1236 = vmatpush.msra.mxu1 %v2352_v6  ;;  %v2632_v49 = vsub.f32 %v913_v24, %v2619_v13  ;;  %v910_v24 = vld [vmem:[#allocation8 + $0xa8] sm:$0xff] }
  0xe3   :  { %1324 = vmatpush.msra.mxu3 %v1323_v52  ;;  %v1334_v26 = vsub.f32 %v2589_v58, %v2898_v48  ;;  %1279 = vmatpush.msra.mxu2 %v2598_v27  ;;  %v1340_v20 = vsub.f32 %v2604_v14, %v2897_v30  ;;  %v911_v52 = vld [vmem:[#allocation8 + $0xb0] sm:$0xff]  ;;  %v2659_v53 = vand.u32 4294901760, %v910_v24 }
  0xe4   :  { %v807_v60 = vmul.f32 2.1237322e-06, %v2564_v63  ;;  %v818_v10 = vmul.f32 3.8918573e-05, %v2564_v63  ;;  %1238 = vmatpush.msra.mxu1 %v2365_v1  ;;  %v2887_v1 = vand.u32 4294901760, %v2611_v35  ;;  %v2896_v18 = vand.u32 4294901760, %v2632_v49 }
  0xe5   :  { %v2645_v23 = vand.u32 4294901760, %v911_v52  ;;  %1281 = vmatpush.msra.mxu2 %v2619_v13 }
  0xe6   :  { %v808_v59 = vadd.f32 0.00028619796, %v807_v60  ;;  %v819_v40 = vadd.f32 0.001143296, %v818_v10  ;;  %v1329_v10 = vand.u32 4294901760, %v1328_v4  ;;  %1240 = vmatpush.msra.mxu1 %v2372_v8  ;;  %v1335_v4 = vand.u32 4294901760, %v1334_v26 }
  0xe7   :  { %v2657_v31 = vsub.f32 %v911_v52, %v2645_v23  ;;  %1283 = vmatpush.msra.mxu2 %v2623_v0 }
  0xe8   :  { %v809_v6 = vmul.f32 %v808_v59, %v2564_v63  ;;  %v820_v60 = vmul.f32 %v819_v40, %v2564_v63  ;;  %1330 = vmatpush.msra.mxu3 %v1329_v10  ;;  %1242 = vmatpush.msra.mxu1 %v2385_v19  ;;  %v1341_v10 = vand.u32 4294901760, %v1340_v20 }
  0xe9   :  { %v2895_v52 = vand.u32 4294901760, %v2657_v31  ;;  %1285 = vmatpush.msra.mxu2 %v2645_v23 }
  0xea   :  { %v810_v59 = vadd.f32 0.0036580483, %v809_v6  ;;  %v821_v40 = vadd.f32 0.014752088, %v820_v60  ;;  %v1346_v6 = vsub.f32 %v2611_v35, %v2887_v1  ;;  %v2640_v60 = vsub.f32 %v912_v17, %v2623_v0  ;;  %1336 = vmatpush.msra.mxu3 %v1335_v4  ;;  %1244 = vmatpush.msra.mxu1 %v2395_v36 }
  0xeb   :  { %v1352_v17 = vsub.f32 %v2632_v49, %v2896_v18  ;;  %v1364_v28 = vsub.f32 %v2657_v31, %v2895_v52  ;;  %1287 = vmatpush.msra.mxu2 %v2659_v53 }
  0xec   :  { %v822_v8 = vmul.f32 %v821_v40, %v2564_v63  ;;  %v811_v26 = vmul.f32 %v810_v59, %v2564_v63  ;;  %v1347_v40 = vand.u32 4294901760, %v1346_v6  ;;  %v2888_v1 = vand.u32 4294901760, %v2640_v60  ;;  %1342 = vmatpush.msra.mxu3 %v1341_v10  ;;  %v909_v59 = vld [vmem:[#allocation8 + $0xa0] sm:$0xff]  ;;  %1246 = vmatpush.msra.mxu1 %v2410_v33  ;;  %v908_v33 = vld [vmem:[#allocation8 + $0x98] sm:$0xff] }
  0xed   :  { %v2666_v20 = vand.u32 4294901760, %v909_v59  ;;  %v1353_v34 = vand.u32 4294901760, %v1352_v17  ;;  %v2687_v61 = vand.u32 4294901760, %v908_v33 }
  0xee   :  { %v823_v19 = vadd.f32 0.112945676, %v822_v8  ;;  %v1358_v4 = vsub.f32 %v2640_v60, %v2888_v1  ;;  %1348 = vmatpush.msra.mxu3 %v1347_v40  ;;  %v2674_v8 = vsub.f32 %v910_v24, %v2659_v53  ;;  %v812_v6 = vadd.f32 0.05243302, %v811_v26  ;;  %1248 = vmatpush.msra.mxu1 %v2426_v47  ;;  %v907_v24 = vld [vmem:[#allocation8 + $0x90] sm:$0xff] }
  0xef   :  { %v2678_v1 = vsub.f32 %v909_v59, %v2666_v20  ;;  %v2692_v40 = vand.u32 4294901760, %v907_v24  ;;  %v1365_v59 = vand.u32 4294901760, %v1364_v28  ;;  %v2701_v25 = vsub.f32 %v908_v33, %v2687_v61  ;;  %1289 = vmatpush.msra.mxu2 %v2666_v20 }
  0xf0   :  { %v824_v36 = vmul.f32 %v823_v19, %v2564_v63  ;;  %v1359_v19 = vand.u32 4294901760, %v1358_v4  ;;  %1354 = vmatpush.msra.mxu3 %v1353_v34  ;;  %v2894_v9 = vand.u32 4294901760, %v2674_v8  ;;  %1250 = vmatpush.msra.mxu1 %v2432_v62  ;;  %v906_v62 = vld [vmem:[#allocation8 + $0x88] sm:$0xff] }
  0xf1   :  { %v2892_v26 = vand.u32 4294901760, %v2678_v1  ;;  %v2891_v16 = vand.u32 4294901760, %v2701_v25  ;;  %v2715_v33 = vsub.f32 %v907_v24, %v2692_v40  ;;  %1291 = vmatpush.msra.mxu2 %v2687_v61 }
  0xf2   :  { %v825_v10 = vadd.f32 0.4994258, %v824_v36  ;;  %1360 = vmatpush.msra.mxu3 %v1359_v19  ;;  %v1370_v45 = vsub.f32 %v2674_v8, %v2894_v9  ;;  %v813_v36 = vmul.f32 %v812_v6, %v2564_v63  ;;  %1252 = vmatpush.msra.mxu1 %v2447_v43  ;;  %v2717_v6 = vand.u32 4294901760, %v906_v62 }
  0xf3   :  { %v1382_v42 = vsub.f32 %v2701_v25, %v2891_v16  ;;  %v2890_v24 = vand.u32 4294901760, %v2715_v33  ;;  %1293 = vmatpush.msra.mxu2 %v2692_v40 }
  0xf4   :  { %v826_v47 = vmul.f32 %v825_v10, %v2564_v63  ;;  %v1376_v10 = vsub.f32 %v2678_v1, %v2892_v26  ;;  %1366 = vmatpush.msra.mxu3 %v1365_v59  ;;  %v1371_v22 = vand.u32 4294901760, %v1370_v45  ;;  %1254 = vmatpush.msra.mxu1 %v2457_v55  ;;  %v814_v55 = vadd.f32 0.18741608, %v813_v36 }
  0xf5   :  { %v498_v17 = vpop.f32.mrf.mxu2  ;;  %v1383_v45 = vand.u32 4294901760, %v1382_v42  ;;  %1295 = vmatpush.msra.mxu2 %v2717_v6 }
  0xf6   :  { %v2704_v4 = vadd.f32 1.0, %v826_v47  ;;  %v499_v34 = vadd.f32 %v498_v17, %v116_v56  ;;  %v905_v56 = vld [vmem:[#allocation8 + $0x80] sm:$0xff]  ;;  %1372 = vmatpush.msra.mxu3 %v1371_v22  ;;  %v1377_v28 = vand.u32 4294901760, %v1376_v10  ;;  %1256 = vmatpush.msra.mxu1 %v2472_v3  ;;  %v2728_v47 = vsub.f32 %v906_v62, %v2717_v6 }
  0xf7   :  { %v2730_v17 = vand.u32 4294901760, %v905_v56  ;;  %v1388_v3 = vsub.f32 %v2715_v33, %v2890_v24 }
  0xf8   :  { %1639 = vrcp.f32 %v2704_v4  ;;  %v599_v43 = vpop.f32.mrf.mxu3  ;;  %1378 = vmatpush.msra.mxu3 %v1377_v28  ;;  %1258 = vmatpush.msra.mxu1 %v2487_v46  ;;  %v2889_v10 = vand.u32 4294901760, %v2728_v47  ;;  %vm833_vm1 = vweird.f32 %v2704_v4 }
  0xf9   :  { %v600_v19 = vadd.f32 %v599_v43, %v499_v34  ;;  %v2739_v62 = vsub.f32 %v905_v56, %v2730_v17  ;;  %1297 = vmatpush.msra.mxu2 %v2730_v17  ;;  %v815_v56 = vmul.f32 %v814_v55, %v2564_v63  ;;  %v837_v63 = vand.u32 2147483647, %v2704_v4 }
  0xfa   :  { %v653_v15 = vpop.f32.mrf.mxu0  ;;  %1384 = vmatpush.msra.mxu3 %v1383_v45  ;;  %1260 = vmatpush.msra.mxu1 %v2493_v41  ;;  %v1394_v46 = vsub.f32 %v2728_v47, %v2889_v10 }
  0xfb   :  { %v654_v59 = vadd.f32 %v653_v15, %v600_v19  ;;  %v1389_v19 = vand.u32 4294901760, %v1388_v3  ;;  %v2893_v28 = vand.u32 4294901760, %v2739_v62  ;;  %v839_v3 = vand.u32 2147483648, %v2704_v4 }
  0xfc   :  { %v692_v34 = vpop.f32.mrf.mxu1  ;;  %v816_v16 = vadd.f32 1.1283791, %v815_v56  ;;  %vm838_vm3 = vcmp.eq.f32.partialorder %v837_v63, 8.507059e+37 }
  0xfd   :  { %v693_v22 = vadd.f32 %v692_v34, %v654_v59  ;;  %1390 = vmatpush.msra.mxu3 %v1389_v19  ;;  %v1395_v59 = vand.u32 4294901760, %v1394_v46  ;;  %v1400_v41 = vsub.f32 %v2739_v62, %v2893_v28 }
  0xfe   :  { %v1640_v36 = vpop.eup %1639  ;;  %v761_v43 = vpop.f32.mrf.mxu2  ;;  %v817_v46 = vmul.f32 %v816_v16, %v2538_v38 }
  0xff   :  { %v829_v42 = vmul.f32 %v1640_v36, %v2704_v4  ;;  %v762_v15 = vadd.f32 %v761_v43, %v693_v22  ;;  %1396 = vmatpush.msra.mxu3 %v1395_v59  ;;  %v1401_v24 = vand.u32 4294901760, %v1400_v41  ;;  %vm834_vm0 = vweird.f32 %v1640_v36 }
 0x100   :  { %vm835_vm2 = vmor %vm833_vm1, %vm834_vm0  ;;  %v840_v43 = vor.u32 1.1754944e-38, %v839_v3 }
 0x101   :  { %v830_v45 = vsub.f32 1.0, %v829_v42  ;;  %v798_v34 = vpop.f32.mrf.mxu3  ;;  %1402 = vmatpush.msra.mxu3 %v1401_v24 }
 0x102   :  { %v2754_v10 = vadd.f32 %v798_v34, %v762_v15 }
 0x103   :  { %v831_v26 = vmul.f32 %v1640_v36, %v830_v45 }
 0x104   :  { %v2758_v55 = vmul.f32 0.70710677, %v2754_v10 }
 0x105   :  { %v832_v22 = vadd.f32 %v1640_v36, %v831_v26  ;;  %v801_v26 = vmul.f32 0.5, %v2527_v39 }
 0x106   :  { %v845_v19 = vmul.f32 %v2758_v55, %v2758_v55 }
 0x107   :  { %v836_v42 = vsel %vm835_vm2, %v1640_v36, %v832_v22 }
 0x108   :  { %v841_v56 = vsel %vm838_vm3, %v840_v43, %v836_v42  ;;  %v846_v15 = vmin.f32 %v845_v19, 16.0 }
 0x109   :  { %v842_v59 = vmul.f32 %v841_v56, %v817_v46 }
 0x10a   :  { %v847_v41 = vmul.f32 2.1237322e-06, %v846_v15  ;;  %v858_v45 = vmul.f32 3.8918573e-05, %v846_v15 }
 0x10b   :  { %v1627_v34 = vclamps-f32 %v842_v59, 1.0 }
 0x10c   :  { %v848_v28 = vadd.f32 0.00028619796, %v847_v41  ;;  %v859_v24 = vadd.f32 0.001143296, %v858_v45 }
 0x10d   :  { %v885_v4 = vadd.f32 1.0, %v1627_v34 }
 0x10e   :  { %v849_v9 = vmul.f32 %v848_v28, %v846_v15  ;;  %v860_v3 = vmul.f32 %v859_v24, %v846_v15 }
 0x10f   :  { %v887_v52 = vmul.f32 %v885_v4, %v801_v26 }
 0x110   :  { %v861_v18 = vadd.f32 0.014752088, %v860_v3  ;;  %v850_v48 = vadd.f32 0.0036580483, %v849_v9 }
 0x111   :  { %v957_v30 = vand.u32 4294901760, %v887_v52 }
 0x112   :  { %v862_v38 = vmul.f32 %v861_v18, %v846_v15  ;;  %v851_v63 = vmul.f32 %v850_v48, %v846_v15 }
 0x113   :  { %v958_v16 = vsub.f32 %v887_v52, %v957_v30  ;;  %1063 = vmatmul.f32.vlgmr.msrb.gmra.mxu1 %v957_v30 }
 0x114   :  { %v863_v36 = vadd.f32 0.112945676, %v862_v38  ;;  %1463 = vmatpush.msrb.mxu1 %v2524_v2  ;;  %v852_v18 = vadd.f32 0.05243302, %v851_v63 }
 0x115   :  { %1117 = vmatmul.f32.vlgmr.msrb.gmra.mxu2 %v958_v16  ;;  %v959_v22 = vand.u32 4294901760, %v958_v16 }
 0x116   :  { %v864_v43 = vmul.f32 %v863_v36, %v846_v15  ;;  %1465 = vmatpush.msrb.mxu1 %v2534_v12  ;;  %1504 = vmatpush.msrb.mxu2 %v1309_v51  ;;  %v853_v9 = vmul.f32 %v852_v18, %v846_v15 }
 0x117   :  { %1156 = vmatmul.f32.vlgmr.msrb.gmra.mxu3 %v959_v22  ;;  %v960_v39 = vsub.f32 %v958_v16, %v959_v22 }
 0x118   :  { %v865_v28 = vadd.f32 0.4994258, %v864_v43  ;;  %1467 = vmatpush.msrb.mxu1 %v2547_v37  ;;  %1571 = vmatpush.msrb.mxu3 %v2524_v2  ;;  %v854_v2 = vadd.f32 0.18741608, %v853_v9 }
 0x119   :  { %v961_v52 = vand.u32 4294901760, %v960_v39  ;;  %1508 = vmatpush.msrb.mxu2 %v1315_v50  ;;  %v2938_v50 = vand.u32 4294901760, %v2604_v14 }
 0x11a   :  { %v866_v48 = vmul.f32 %v865_v28, %v846_v15  ;;  %1469 = vmatpush.msrb.mxu1 %v2558_v5  ;;  %1573 = vmatpush.msrb.mxu3 %v2534_v12 }
 0x11b   :  { %962 = vmatmul.f32.vlgmr.msrb.gmra.mxu0 %v961_v52  ;;  %1262 = vmatmul.f32.vlgmr.msra.gmra.mxu1 %v957_v30 }
 0x11c   :  { %v867_v51 = vadd.f32 1.0, %v866_v48  ;;  %1410 = vmatpush.msrb.mxu0 %v2532_v11  ;;  %1471 = vmatpush.msrb.mxu1 %v2576_v57  ;;  %v2937_v11 = vand.u32 4294901760, %v2589_v58 }
 0x11d   :  { %1575 = vmatpush.msrb.mxu3 %v2547_v37  ;;  %1512 = vmatpush.msrb.mxu2 %v1321_v44 }
 0x11e   :  { %1641 = vrcp.f32 %v867_v51  ;;  %1413 = vmatpush.msrb.mxu0 %v2544_v32  ;;  %1473 = vmatpush.msrb.mxu1 %v2591_v54  ;;  %v855_v32 = vmul.f32 %v854_v2, %v846_v15  ;;  %vm873_vm5 = vweird.f32 %v867_v51 }
 0x11f   :  { %1577 = vmatpush.msrb.mxu3 %v2558_v5  ;;  %1516 = vmatpush.msrb.mxu2 %v1327_v21  ;;  %v877_v21 = vand.u32 2147483647, %v867_v51 }
 0x120   :  { %1416 = vmatpush.msrb.mxu0 %v2561_v29  ;;  %1475 = vmatpush.msrb.mxu1 %v2598_v27  ;;  %v2939_v29 = vand.u32 4294901760, %v2611_v35  ;;  %v856_v44 = vadd.f32 1.1283791, %v855_v32 }
 0x121   :  { %1579 = vmatpush.msrb.mxu3 %v2576_v57  ;;  %1520 = vmatpush.msrb.mxu2 %v2937_v11  ;;  %vm878_vm7 = vcmp.eq.f32.partialorder %v877_v21, 8.507059e+37 }
 0x122   :  { %1419 = vmatpush.msrb.mxu0 %v2573_v7  ;;  %1477 = vmatpush.msrb.mxu1 %v2619_v13  ;;  %v879_v7 = vand.u32 2147483648, %v867_v51 }
 0x123   :  { %1225 = vmatmul.f32.vlgmr.msra.gmra.mxu0 %v957_v30  ;;  %1581 = vmatpush.msrb.mxu3 %v2591_v54 }
 0x124   :  { %v1642_v12 = vpop.eup %1641  ;;  %1422 = vmatpush.msrb.mxu0 %v2589_v58  ;;  %1479 = vmatpush.msrb.mxu1 %v2623_v0  ;;  %v2940_v58 = vand.u32 4294901760, %v2632_v49 }
 0x125   :  { %v869_v37 = vmul.f32 %v1642_v12, %v867_v51  ;;  %1583 = vmatpush.msrb.mxu3 %v2598_v27  ;;  %1524 = vmatpush.msrb.mxu2 %v2938_v50  ;;  %vm874_vm4 = vweird.f32 %v1642_v12  ;;  %v2941_v27 = vand.u32 4294901760, %v2640_v60 }
 0x126   :  { %1425 = vmatpush.msrb.mxu0 %v2604_v14  ;;  %1481 = vmatpush.msrb.mxu1 %v2645_v23  ;;  %vm875_vm6 = vmor %vm873_vm5, %vm874_vm4  ;;  %v880_v14 = vor.u32 1.1754944e-38, %v879_v7 }
 0x127   :  { %v870_v5 = vsub.f32 1.0, %v869_v37  ;;  %1585 = vmatpush.msrb.mxu3 %v2619_v13  ;;  %1528 = vmatpush.msrb.mxu2 %v2939_v29  ;;  %v2942_v13 = vand.u32 4294901760, %v2657_v31 }
 0x128   :  { %1428 = vmatpush.msrb.mxu0 %v2611_v35  ;;  %1483 = vmatpush.msrb.mxu1 %v2659_v53  ;;  %v857_v35 = vmul.f32 %v856_v44, %v2758_v55  ;;  %v2945_v55 = vand.u32 4294901760, %v2701_v25 }
 0x129   :  { %v871_v57 = vmul.f32 %v1642_v12, %v870_v5  ;;  %1587 = vmatpush.msrb.mxu3 %v2623_v0  ;;  %1532 = vmatpush.msrb.mxu2 %v2940_v58 }
 0x12a   :  { %1431 = vmatpush.msrb.mxu0 %v2632_v49  ;;  %1485 = vmatpush.msrb.mxu1 %v2666_v20 }
 0x12b   :  { %v872_v54 = vadd.f32 %v1642_v12, %v871_v57  ;;  %1589 = vmatpush.msrb.mxu3 %v2645_v23  ;;  %1536 = vmatpush.msrb.mxu2 %v2941_v27 }
 0x12c   :  { %1434 = vmatpush.msrb.mxu0 %v2640_v60  ;;  %1487 = vmatpush.msrb.mxu1 %v2687_v61  ;;  %v2943_v60 = vand.u32 4294901760, %v2674_v8 }
 0x12d   :  { %v876_v30 = vsel %vm875_vm6, %v1642_v12, %v872_v54  ;;  %1591 = vmatpush.msrb.mxu3 %v2659_v53  ;;  %1540 = vmatpush.msrb.mxu2 %v2942_v13  ;;  %v2944_v53 = vand.u32 4294901760, %v2678_v1 }
 0x12e   :  { %v881_v0 = vsel %vm878_vm7, %v880_v14, %v876_v30  ;;  %1437 = vmatpush.msrb.mxu0 %v2657_v31  ;;  %1489 = vmatpush.msrb.mxu1 %v2692_v40  ;;  %v802_v31 = vmul.f32 0.5, %v2754_v10  ;;  %v2947_v10 = vand.u32 4294901760, %v2728_v47 }
 0x12f   :  { %v882_v49 = vmul.f32 %v881_v0, %v857_v35  ;;  %1593 = vmatpush.msrb.mxu3 %v2666_v20  ;;  %1544 = vmatpush.msrb.mxu2 %v2943_v60 }
 0x130   :  { %1440 = vmatpush.msrb.mxu0 %v2674_v8  ;;  %1491 = vmatpush.msrb.mxu1 %v2717_v6 }
 0x131   :  { %v1628_v23 = vclamps-f32 %v882_v49, 1.0  ;;  %1595 = vmatpush.msrb.mxu3 %v2687_v61  ;;  %1548 = vmatpush.msrb.mxu2 %v2944_v53  ;;  %v2946_v61 = vand.u32 4294901760, %v2715_v33 }
 0x132   :  { %1443 = vmatpush.msrb.mxu0 %v2678_v1  ;;  %1493 = vmatpush.msrb.mxu1 %v2730_v17 }
 0x133   :  { %v886_v20 = vadd.f32 1.0, %v1628_v23  ;;  %1597 = vmatpush.msrb.mxu3 %v2692_v40  ;;  %1552 = vmatpush.msrb.mxu2 %v2945_v55 }
 0x134   :  { %1446 = vmatpush.msrb.mxu0 %v2701_v25  ;;  %v2948_v25 = vand.u32 4294901760, %v2739_v62 }
 0x135   :  { %v888_v8 = vmul.f32 %v886_v20, %v802_v31  ;;  %1599 = vmatpush.msrb.mxu3 %v2717_v6  ;;  %1556 = vmatpush.msrb.mxu2 %v2946_v61 }
 0x136   :  { %1449 = vmatpush.msrb.mxu0 %v2715_v33 }
 0x137   :  { %v1298_v1 = vand.u32 4294901760, %v888_v8  ;;  %1601 = vmatpush.msrb.mxu3 %v2730_v17  ;;  %1560 = vmatpush.msrb.mxu2 %v2947_v10  ;;  %v1638_v17 = vld [vmem:[%s2857_s4] ss:$0 sm:$0xff]  ;;  %s1779_s4 = smov [#allocation10]  }
 0x138   :  { %1452 = vmatpush.msrb.mxu0 %v2728_v47  ;;  %s1613_s15 = sshll.u32 %s1779_s4, 4  ;;  %s1614_s15 = int_to_ptr.vmem [resolvable:$true] %s1613_s15 }
 0x139   :  { %v1299_v40 = vsub.f32 %v888_v8, %v1298_v1  ;;  %1404 = vmatmul.f32.vlgmr.msra.gmra.mxu3 %v1298_v1  ;;  %1564 = vmatpush.msrb.mxu2 %v2948_v25 }
 0x13a   :  { %1455 = vmatpush.msrb.mxu0 %v2739_v62 }
 0x13b   :  { %1458 = vmatmul.f32.vlgmr.msrb.gmra.mxu0 %v1299_v40  ;;  %v1300_v6 = vand.u32 4294901760, %v1299_v40 }
 0x13d   :  { %1497 = vmatmul.f32.vlgmr.msrb.gmra.mxu1 %v1300_v6  ;;  %v1301_v19 = vsub.f32 %v1299_v40, %v1300_v6 }
 0x13f   :  { %v1302_v33 = vand.u32 4294901760, %v1301_v19 }
 0x141   :  { %1303 = vmatmul.f32.vlgmr.msra.gmra.mxu2 %v1302_v33  ;;  %1603 = vmatmul.f32.vlgmr.msrb.gmra.mxu3 %v1298_v1 }
 0x149   :  { %1566 = vmatmul.f32.vlgmr.msrb.gmra.mxu2 %v1298_v1 }
 0x190   :  { %v1064_v42 = vpop.f32.mrf.mxu1 }
 0x198   :  { %v963_v47 = vpop.f32.mrf.mxu0  ;;  %v1118_v15 = vpop.f32.mrf.mxu2 }
 0x199   :  { %v964_v46 = vadd.f32 %v1638_v17, %v963_v47  ;;  %v1263_v24 = vpop.f32.mrf.mxu1 }
 0x19a   :  { %v1157_v41 = vpop.f32.mrf.mxu3 }
 0x19b   :  { %v1065_v56 = vadd.f32 %v1064_v42, %v964_v46 }
 0x19d   :  { %v1119_v59 = vadd.f32 %v1118_v15, %v1065_v56 }
 0x19f   :  { %v1158_v62 = vadd.f32 %v1157_v41, %v1119_v59 }
 0x1a0   :  { %v1226_v45 = vpop.f32.mrf.mxu0 }
 0x1a1   :  { %v1227_v34 = vadd.f32 %v1226_v45, %v1158_v62 }
 0x1a3   :  { %v1264_v26 = vadd.f32 %v1263_v24, %v1227_v34 }
 0x1b8   :  { %v1459_v36 = vpop.f32.mrf.mxu0 }
 0x1ba   :  { %v1498_v22 = vpop.f32.mrf.mxu1 }
 0x1bc   :  { %v1405_v4 = vpop.f32.mrf.mxu3 }
 0x1c4   :  { %v1304_v3 = vpop.f32.mrf.mxu2  ;;  %v1604_v18 = vpop.f32.mrf.mxu3 }
 0x1c5   :  { %v1305_v38 = vadd.f32 %v1304_v3, %v1264_v26 }
 0x1c7   :  { %v1406_v16 = vadd.f32 %v1405_v4, %v1305_v38 }
 0x1c9   :  { %v1460_v63 = vadd.f32 %v1459_v36, %v1406_v16 }
 0x1cb   :  { %v1499_v43 = vadd.f32 %v1498_v22, %v1460_v63 }
 0x1cc   :  { %v1567_v39 = vpop.f32.mrf.mxu2 }
 0x1cd   :  { %v1568_v28 = vadd.f32 %v1567_v39, %v1499_v43 }
 0x1cf   :  { %v1605_v52 = vadd.f32 %v1604_v18, %v1568_v28 }
 0x1d1   :  { %1607 = vst [vmem:[#allocation10] sm:$0xff] %v1605_v52 }
 0x1d2   :  { %1618 = dma.vmem_to_hbm [thread:$0]  %s1614_s15, 128, %s1616_s18, [#allocation4]  }
 0x1d3   :  { %1769 = dma.done.wait [#allocation4], 128  }
 0x1d4   :  { %1770 = vsyncadd [#allocation4], 4294967168 }
 0x1d5   :  { %1623 = vsyncpa [#allocation3], 1 }
 0x1d6   :  { %1624 = vsyncpa [#allocation6], 1 }
 0x1d7   :  { %1625 = vsyncpa [#allocation9], 1 }
 0x1d8   :  { %1626 = vsyncpa [#allocation4], 1 }

</bundles_post_ra>
